<compile_context>
chip_gen: v7x
topology: tpu7x:2x2x1
jax: 0.10.0
libtpu: 0.0.40
codegen_flags: <defaults>
</compile_context>

<pallas_src>
import jax
import jax.numpy as jnp
from jax.experimental import pallas as pl
from jax.experimental.pallas import tpu as pltpu

C_OUT = 256   # channel width used by every conv / fc layer in the module


def charcnn_kernel(x_ref, w1_ref, b1_ref, w2_ref, b2_ref, w3_ref, b3_ref,
                   wf1_ref, bf1_ref, wf2_ref, bf2_ref, o_ref, h1p_ref):
    f32, bf16 = jnp.float32, jnp.bfloat16
    B = o_ref.shape[0]          # examples in this batch tile
    rows = 6 * B                # pool-1 output rows per tile (position-major)
    C = C_OUT

    # ---- conv1 + ReLU + MaxPool1d(3,3), pooling folded onto the lane axis ----
    # (B*6, 5*C_in) @ (5*C_in, 3*256): the 3 conv outputs of each pool group
    # land in lane blocks [0:256), [256:512), [512:768).
    y1 = jnp.dot(x_ref[...], w1_ref[...], preferred_element_type=f32)  # (6B, 768)
    h1 = jnp.maximum(jnp.maximum(y1[:, 0:C], y1[:, C:2 * C]), y1[:, 2 * C:3 * C])
    h1 = jnp.maximum(h1 + b1_ref[...], 0.0)        # pool1(relu(conv1)), f32 (6B,256)

    # ---- stage pooled-1 into a zero-halo bf16 scratch (position-major) ----
    zero_blk = jnp.zeros((B, C), bf16)
    h1p_ref[pl.ds(0, B), :] = zero_blk             # halo: padded position -1
    h1p_ref[pl.ds(B, rows), :] = h1.astype(bf16)   # positions 0..5
    h1p_ref[pl.ds(7 * B, B), :] = zero_blk         # halo: padded position 6

    # ---- conv2 (k=3, s=1, p=1): three accumulating K=256 dots on shifted views
    y2 = jnp.dot(h1p_ref[pl.ds(0, rows), :], w2_ref[pl.ds(0, C), :],
                 preferred_element_type=f32)
    y2 = y2 + jnp.dot(h1p_ref[pl.ds(B, rows), :], w2_ref[pl.ds(C, C), :],
                      preferred_element_type=f32)
    y2 = y2 + jnp.dot(h1p_ref[pl.ds(2 * B, rows), :], w2_ref[pl.ds(2 * C, C), :],
                      preferred_element_type=f32)
    y2 = jnp.maximum(y2 + b2_ref[...], 0.0)        # (6B, 256) f32

    # ---- MaxPool1d(3,3): aligned contiguous value slices (position-major) ----
    h2a = jnp.maximum(jnp.maximum(y2[0:B], y2[B:2 * B]), y2[2 * B:3 * B])
    h2b = jnp.maximum(jnp.maximum(y2[3 * B:4 * B], y2[4 * B:5 * B]), y2[5 * B:6 * B])

    # ---- conv3 (k=2, no pad) + ReLU: two accumulating K=256 dots ----
    y3 = jnp.dot(h2a.astype(bf16), w3_ref[pl.ds(0, C), :], preferred_element_type=f32)
    y3 = y3 + jnp.dot(h2b.astype(bf16), w3_ref[pl.ds(C, C), :],
                      preferred_element_type=f32)
    y3 = jnp.maximum(y3 + b3_ref[...], 0.0)        # (B, 256) == flattened

    # ---- fc1 / fc2 (Linear + ReLU; Dropout = identity at inference) ----
    f1 = jnp.maximum(jnp.dot(y3.astype(bf16), wf1_ref[...],
                             preferred_element_type=f32) + bf1_ref[...], 0.0)
    f2 = jnp.maximum(jnp.dot(f1.astype(bf16), wf2_ref[...],
                             preferred_element_type=f32) + bf2_ref[...], 0.0)
    o_ref[...] = f2.astype(o_ref.dtype)


def charcnn_forward(x_ncl, params, *, b_tile=256):
    """x_ncl: (N, C_in, L) exactly like the PyTorch module input.

    b_tile: examples per grid step.  Default 256 works on all generations;
    raise to 512-1024 on v5e/v6e (128 MiB VMEM), keep <=512 on v7x (64 MiB)
    and keep N/b_tile >= 2 (ideally even) so both v7x TensorCores get work.
    """
    N, C_in, L = x_ncl.shape
    assert L == 18, \
        "fc1(256,256) after flatten requires conv3 output length == 1 (L == 18)"
    b_tile = min(b_tile, N)
    assert N % b_tile == 0, "batch must be divisible by b_tile"
    assert b_tile == N or b_tile % 16 == 0, \
        "b_tile must be a multiple of 16 when tiling (bf16 sublane alignment)"

    f32, bf16 = jnp.float32, jnp.bfloat16
    K_in = 5 * C_in               # 5 padded positions per pool-1 group
    n_tiles = N // b_tile
    rows = 6 * b_tile

    # ---- input prep: one im2col row per pool-1 group, position-major per tile
    x = jnp.transpose(x_ncl, (0, 2, 1)).astype(f32)            # (N, 18, C_in)
    xp = jnp.pad(x, ((0, 0), (1, 1), (0, 0)))                  # (N, 20, C_in)
    cols = [xp[:, d:d + 18:3, :] for d in range(5)]            # 5 x (N, 6, C_in)
    x_i2c = jnp.concatenate(cols, axis=-1)                     # (N, 6, 5*C_in)
    x_i2c = (x_i2c.reshape(n_tiles, b_tile, 6, K_in)
                  .transpose(0, 2, 1, 3)                       # (tiles, 6, B, K)
                  .reshape(n_tiles * rows, K_in).astype(bf16))

    # ---- conv1 weight: block-shifted replication (5*C_in, 3*256) ----
    # Column block j (conv output 3g+j) uses taps at padded positions j..j+2.
    w1 = params['conv1_w'].astype(f32)                         # (256, C_in, 3)
    w1rep = jnp.zeros((K_in, 3 * C_OUT), f32)
    for j in range(3):
        for k in range(3):
            w1rep = w1rep.at[(j + k) * C_in:(j + k + 1) * C_in,
                             j * C_OUT:(j + 1) * C_OUT].set(w1[:, :, k].T)
    w1rep = w1rep.astype(bf16)

    # ---- conv2/conv3 weights: tap-stacked (in, out) layout, fc weights W^T ----
    w2stk = jnp.concatenate(
        [params['conv2_w'][:, :, k].T for k in range(3)], axis=0).astype(bf16)
    w3stk = jnp.concatenate(
        [params['conv3_w'][:, :, k].T for k in range(2)], axis=0).astype(bf16)
    wf1 = params['fc1_w'].T.astype(bf16)
    wf2 = params['fc2_w'].T.astype(bf16)
    b1 = params['conv1_b'].reshape(1, C_OUT).astype(f32)
    b2 = params['conv2_b'].reshape(1, C_OUT).astype(f32)
    b3 = params['conv3_b'].reshape(1, C_OUT).astype(f32)
    bf1 = params['fc1_b'].reshape(1, C_OUT).astype(f32)
    bf2 = params['fc2_b'].reshape(1, C_OUT).astype(f32)

    const = lambda i: (0, 0)
    in_specs = [
        pl.BlockSpec((rows, K_in), lambda i: (i, 0)),          # x (pool-group im2col)
        pl.BlockSpec((K_in, 3 * C_OUT), const),                # conv1 replicated W
        pl.BlockSpec((1, C_OUT), const),                       # b1
        pl.BlockSpec((3 * C_OUT, C_OUT), const),               # conv2 tap-stacked W
        pl.BlockSpec((1, C_OUT), const),                       # b2
        pl.BlockSpec((2 * C_OUT, C_OUT), const),               # conv3 tap-stacked W
        pl.BlockSpec((1, C_OUT), const),                       # b3
        pl.BlockSpec((C_OUT, C_OUT), const),                   # fc1 W^T
        pl.BlockSpec((1, C_OUT), const),                       # fc1 b
        pl.BlockSpec((C_OUT, C_OUT), const),                   # fc2 W^T
        pl.BlockSpec((1, C_OUT), const),                       # fc2 b
    ]
    out_specs = pl.BlockSpec((b_tile, C_OUT), lambda i: (i, 0))
    scratch_shapes = [pltpu.VMEM((8 * b_tile, C_OUT), bf16)]   # pooled-1 + zero halos

    # ---- VMEM limit derived from actual per-tile buffer sizes ----
    hb, fb = 2, 4
    io_bytes = 2 * rows * K_in * hb + 2 * b_tile * C_OUT * fb          # double-buffered
    wt_bytes = 2 * (hb * (K_in * 3 * C_OUT + 3 * C_OUT * C_OUT
                          + 2 * C_OUT * C_OUT + 2 * C_OUT * C_OUT)
                    + fb * 5 * C_OUT)
    sc_bytes = 8 * b_tile * C_OUT * hb
    val_bytes = (rows * 3 * C_OUT * fb      # y1 (6B, 768) f32
                 + 2 * rows * C_OUT * fb    # y2 / h1 f32
                 + rows * C_OUT * hb        # h1 bf16
                 + 8 * b_tile * C_OUT * fb) # small tails (h2/y3/fc)
    vmem_limit = max(32 << 20, min(56 << 20,
                                   2 * (io_bytes + wt_bytes + sc_bytes + val_bytes)))

    return pl.pallas_call(
        charcnn_kernel,
        out_shape=jax.ShapeDtypeStruct((N, C_OUT), jnp.float32),
        grid_spec=pltpu.PrefetchScalarGridSpec(
            num_scalar_prefetch=0,
            grid=(n_tiles,),
            in_specs=in_specs,
            out_specs=out_specs,
            scratch_shapes=scratch_shapes),
        compiler_params=pltpu.CompilerParams(
            dimension_semantics=("parallel",),
            vmem_limit_bytes=int(vmem_limit)),
    )(x_i2c, w1rep, b1, w2stk, b2, w3stk, b3, wf1, bf1, wf2, bf2)


def init_params(key, c_in):
    """Deterministic PyTorch-style uniform(-1/sqrt(fan_in), 1/sqrt(fan_in)) init."""
    ks = jax.random.split(key, 10)

    def u(k, shape, fan_in):
        bound = 1.0 / float(fan_in) ** 0.5
        return jax.random.uniform(k, shape, jnp.float32, -bound, bound)

    return {
        'conv1_w': u(ks[0], (C_OUT, c_in, 3), c_in * 3),
        'conv1_b': u(ks[1], (C_OUT,), c_in * 3),
        'conv2_w': u(ks[2], (C_OUT, C_OUT, 3), C_OUT * 3),
        'conv2_b': u(ks[3], (C_OUT,), C_OUT * 3),
        'conv3_w': u(ks[4], (C_OUT, C_OUT, 2), C_OUT * 2),
        'conv3_b': u(ks[5], (C_OUT,), C_OUT * 2),
        'fc1_w':   u(ks[6], (C_OUT, C_OUT), C_OUT),
        'fc1_b':   u(ks[7], (C_OUT,), C_OUT),
        'fc2_w':   u(ks[8], (C_OUT, C_OUT), C_OUT),
        'fc2_b':   u(ks[9], (C_OUT,), C_OUT),
    }


def reference_forward(x_ncl, params):
    """Pure-JAX f32 reference mirroring the PyTorch forward (eval mode)."""
    x = jnp.transpose(x_ncl, (0, 2, 1))                           # (N, L, C)

    def conv1d(h, w, b, pad):
        K = w.shape[2]
        if pad:
            h = jnp.pad(h, ((0, 0), (pad, pad), (0, 0)))
        Lout = h.shape[1] - K + 1
        out = b[None, None, :]
        for k in range(K):
            out = out + jnp.einsum('nlc,oc->nlo', h[:, k:k + Lout, :], w[:, :, k])
        return out

    def pool3(y):
        N, L, C = y.shape
        return jnp.max(y.reshape(N, L // 3, 3, C), axis=2)

    y = pool3(jax.nn.relu(conv1d(x, params['conv1_w'], params['conv1_b'], 1)))
    y = pool3(jax.nn.relu(conv1d(y, params['conv2_w'], params['conv2_b'], 1)))
    y = jax.nn.relu(conv1d(y, params['conv3_w'], params['conv3_b'], 0))
    y = y.reshape(y.shape[0], -1)                                 # (N, 256)
    y = jax.nn.relu(y @ params['fc1_w'].T + params['fc1_b'])      # Dropout = identity
    y = jax.nn.relu(y @ params['fc2_w'].T + params['fc2_b'])      # Dropout = identity
    return y


if __name__ == "__main__":
    # fc1 expects 256 features after flatten => conv3 output length 1 => L = 18.
    # N=32 with b_tile=16 gives a 2-step parallel grid (exercises batch tiling).
    N, C_IN, L = 32, 4, 18
    key = jax.random.PRNGKey(0)
    kx, kp = jax.random.split(key)

    x = jax.random.normal(kx, (N, C_IN, L), jnp.float32)          # PyTorch (N, C, L)
    params = init_params(kp, C_IN)

    out = charcnn_forward(x, params, b_tile=16)
    out = jax.block_until_ready(out)

    ref = jax.block_until_ready(reference_forward(x, params))
    assert out.shape == (N, 256), out.shape
    # Tolerance accounts for intentional bf16 MXU inputs (f32 accumulation).
    assert jnp.allclose(out, ref, rtol=2e-2, atol=2e-2), \
        f"max abs err {jnp.max(jnp.abs(out - ref))}"

    print("KERNEL_OK")
</pallas_src>

<mosaic_0001>
module attributes {stable_mosaic.version = 11 : i64} {
  func.func @charcnn_kernel(%arg0: i32, %arg1: memref<96x20xbf16, #tpu.memory_space<vmem>>, %arg2: memref<20x768xbf16, #tpu.memory_space<vmem>>, %arg3: memref<1x256xf32, #tpu.memory_space<vmem>>, %arg4: memref<768x256xbf16, #tpu.memory_space<vmem>>, %arg5: memref<1x256xf32, #tpu.memory_space<vmem>>, %arg6: memref<512x256xbf16, #tpu.memory_space<vmem>>, %arg7: memref<1x256xf32, #tpu.memory_space<vmem>>, %arg8: memref<256x256xbf16, #tpu.memory_space<vmem>>, %arg9: memref<1x256xf32, #tpu.memory_space<vmem>>, %arg10: memref<256x256xbf16, #tpu.memory_space<vmem>>, %arg11: memref<1x256xf32, #tpu.memory_space<vmem>>, %arg12: memref<16x256xf32, #tpu.memory_space<vmem>>, %arg13: memref<128x256xbf16, #tpu.memory_space<vmem>>) attributes {dimension_semantics = [#tpu.dimension_semantics<parallel>], iteration_bounds = array<i64: 2>, scalar_prefetch = 0 : i64, scratch_operands = 1 : i64, tpu.core_type = #tpu.core_type<tc>, window_params = [{transform_indices = @transform_0, window_bounds = array<i64: 96, 20>}, {pipeline_mode = #tpu.pipeline_mode<synchronous>, transform_indices = @transform_1, window_bounds = array<i64: 20, 768>}, {pipeline_mode = #tpu.pipeline_mode<synchronous>, transform_indices = @transform_2, window_bounds = array<i64: 1, 256>}, {pipeline_mode = #tpu.pipeline_mode<synchronous>, transform_indices = @transform_3, window_bounds = array<i64: 768, 256>}, {pipeline_mode = #tpu.pipeline_mode<synchronous>, transform_indices = @transform_4, window_bounds = array<i64: 1, 256>}, {pipeline_mode = #tpu.pipeline_mode<synchronous>, transform_indices = @transform_5, window_bounds = array<i64: 512, 256>}, {pipeline_mode = #tpu.pipeline_mode<synchronous>, transform_indices = @transform_6, window_bounds = array<i64: 1, 256>}, {pipeline_mode = #tpu.pipeline_mode<synchronous>, transform_indices = @transform_7, window_bounds = array<i64: 256, 256>}, {pipeline_mode = #tpu.pipeline_mode<synchronous>, transform_indices = @transform_8, window_bounds = array<i64: 1, 256>}, {pipeline_mode = #tpu.pipeline_mode<synchronous>, transform_indices = @transform_9, window_bounds = array<i64: 256, 256>}, {pipeline_mode = #tpu.pipeline_mode<synchronous>, transform_indices = @transform_10, window_bounds = array<i64: 1, 256>}, {transform_indices = @transform_11, window_bounds = array<i64: 16, 256>}]} {
    %c0 = arith.constant 0 : index
    %c0_0 = arith.constant 0 : index
    %0 = vector.load %arg1[%c0, %c0_0] : memref<96x20xbf16, #tpu.memory_space<vmem>>, vector<96x20xbf16>
    %c0_1 = arith.constant 0 : index
    %c0_2 = arith.constant 0 : index
    %1 = vector.load %arg2[%c0_1, %c0_2] : memref<20x768xbf16, #tpu.memory_space<vmem>>, vector<20x768xbf16>
    %cst = arith.constant dense<0.000000e+00> : vector<96x768xf32>
    %2 = tpu.matmul %0, %1, %cst {dimension_numbers = #tpu.dot_dimension_numbers<[1], [0], [0], [1], [0, 0, 1, 1], [], []>} : vector<96x20xbf16>, vector<20x768xbf16>, vector<96x768xf32> -> vector<96x768xf32>
    %3 = vector.extract_strided_slice %2 {offsets = [0, 0], sizes = [96, 256], strides = [1, 1]} : vector<96x768xf32> to vector<96x256xf32>
    %4 = vector.extract_strided_slice %2 {offsets = [0, 256], sizes = [96, 256], strides = [1, 1]} : vector<96x768xf32> to vector<96x256xf32>
    %5 = arith.maximumf %3, %4 : vector<96x256xf32>
    %6 = vector.extract_strided_slice %2 {offsets = [0, 512], sizes = [96, 256], strides = [1, 1]} : vector<96x768xf32> to vector<96x256xf32>
    %7 = arith.maximumf %5, %6 : vector<96x256xf32>
    %c0_3 = arith.constant 0 : index
    %c0_4 = arith.constant 0 : index
    %8 = vector.load %arg3[%c0_3, %c0_4] : memref<1x256xf32, #tpu.memory_space<vmem>>, vector<1x256xf32>
    %9 = vector.broadcast %8 : vector<1x256xf32> to vector<96x256xf32>
    %10 = arith.addf %7, %9 : vector<96x256xf32>
    %cst_5 = arith.constant 0.000000e+00 : f32
    %11 = vector.broadcast %cst_5 : f32 to vector<96x256xf32>
    %12 = arith.maximumf %10, %11 : vector<96x256xf32>
    %cst_6 = arith.constant 0.000000e+00 : bf16
    %13 = vector.broadcast %cst_6 : bf16 to vector<16x256xbf16>
    %c0_7 = arith.constant 0 : index
    %c0_8 = arith.constant 0 : index
    %14 = vector.load %arg13[%c0_7, %c0_8] : memref<128x256xbf16, #tpu.memory_space<vmem>>, vector<16x256xbf16>
    tpu.vector_store %arg13[%c0_7, %c0_8], %13 {strides = array<i32>} : memref<128x256xbf16, #tpu.memory_space<vmem>>, vector<16x256xbf16>,
    %15 = arith.truncf %12 : vector<96x256xf32> to vector<96x256xbf16>
    %c16 = arith.constant 16 : index
    %c0_9 = arith.constant 0 : index
    %16 = vector.load %arg13[%c16, %c0_9] : memref<128x256xbf16, #tpu.memory_space<vmem>>, vector<96x256xbf16>
    tpu.vector_store %arg13[%c16, %c0_9], %15 {strides = array<i32>} : memref<128x256xbf16, #tpu.memory_space<vmem>>, vector<96x256xbf16>,
    %c112 = arith.constant 112 : index
    %c0_10 = arith.constant 0 : index
    %17 = vector.load %arg13[%c112, %c0_10] : memref<128x256xbf16, #tpu.memory_space<vmem>>, vector<16x256xbf16>
    tpu.vector_store %arg13[%c112, %c0_10], %13 {strides = array<i32>} : memref<128x256xbf16, #tpu.memory_space<vmem>>, vector<16x256xbf16>,
    %c0_11 = arith.constant 0 : index
    %c0_12 = arith.constant 0 : index
    %18 = vector.load %arg13[%c0_11, %c0_12] : memref<128x256xbf16, #tpu.memory_space<vmem>>, vector<96x256xbf16>
    %c0_13 = arith.constant 0 : index
    %c0_14 = arith.constant 0 : index
    %19 = vector.load %arg4[%c0_13, %c0_14] : memref<768x256xbf16, #tpu.memory_space<vmem>>, vector<256x256xbf16>
    %cst_15 = arith.constant dense<0.000000e+00> : vector<96x256xf32>
    %20 = tpu.matmul %18, %19, %cst_15 {dimension_numbers = #tpu.dot_dimension_numbers<[1], [0], [0], [1], [0, 0, 1, 1], [], []>} : vector<96x256xbf16>, vector<256x256xbf16>, vector<96x256xf32> -> vector<96x256xf32>
    %c16_16 = arith.constant 16 : index
    %c0_17 = arith.constant 0 : index
    %21 = vector.load %arg13[%c16_16, %c0_17] : memref<128x256xbf16, #tpu.memory_space<vmem>>, vector<96x256xbf16>
    %c256 = arith.constant 256 : index
    %c0_18 = arith.constant 0 : index
    %22 = vector.load %arg4[%c256, %c0_18] : memref<768x256xbf16, #tpu.memory_space<vmem>>, vector<256x256xbf16>
    %cst_19 = arith.constant dense<0.000000e+00> : vector<96x256xf32>
    %23 = tpu.matmul %21, %22, %cst_19 {dimension_numbers = #tpu.dot_dimension_numbers<[1], [0], [0], [1], [0, 0, 1, 1], [], []>} : vector<96x256xbf16>, vector<256x256xbf16>, vector<96x256xf32> -> vector<96x256xf32>
    %24 = arith.addf %20, %23 : vector<96x256xf32>
    %c32 = arith.constant 32 : index
    %c0_20 = arith.constant 0 : index
    %25 = vector.load %arg13[%c32, %c0_20] : memref<128x256xbf16, #tpu.memory_space<vmem>>, vector<96x256xbf16>
    %c512 = arith.constant 512 : index
    %c0_21 = arith.constant 0 : index
    %26 = vector.load %arg4[%c512, %c0_21] : memref<768x256xbf16, #tpu.memory_space<vmem>>, vector<256x256xbf16>
    %cst_22 = arith.constant dense<0.000000e+00> : vector<96x256xf32>
    %27 = tpu.matmul %25, %26, %cst_22 {dimension_numbers = #tpu.dot_dimension_numbers<[1], [0], [0], [1], [0, 0, 1, 1], [], []>} : vector<96x256xbf16>, vector<256x256xbf16>, vector<96x256xf32> -> vector<96x256xf32>
    %28 = arith.addf %24, %27 : vector<96x256xf32>
    %c0_23 = arith.constant 0 : index
    %c0_24 = arith.constant 0 : index
    %29 = vector.load %arg5[%c0_23, %c0_24] : memref<1x256xf32, #tpu.memory_space<vmem>>, vector<1x256xf32>
    %30 = vector.broadcast %29 : vector<1x256xf32> to vector<96x256xf32>
    %31 = arith.addf %28, %30 : vector<96x256xf32>
    %cst_25 = arith.constant 0.000000e+00 : f32
    %32 = vector.broadcast %cst_25 : f32 to vector<96x256xf32>
    %33 = arith.maximumf %31, %32 : vector<96x256xf32>
    %34 = vector.extract_strided_slice %33 {offsets = [0, 0], sizes = [16, 256], strides = [1, 1]} : vector<96x256xf32> to vector<16x256xf32>
    %35 = vector.extract_strided_slice %33 {offsets = [16, 0], sizes = [16, 256], strides = [1, 1]} : vector<96x256xf32> to vector<16x256xf32>
    %36 = arith.maximumf %34, %35 : vector<16x256xf32>
    %37 = vector.extract_strided_slice %33 {offsets = [32, 0], sizes = [16, 256], strides = [1, 1]} : vector<96x256xf32> to vector<16x256xf32>
    %38 = arith.maximumf %36, %37 : vector<16x256xf32>
    %39 = vector.extract_strided_slice %33 {offsets = [48, 0], sizes = [16, 256], strides = [1, 1]} : vector<96x256xf32> to vector<16x256xf32>
    %40 = vector.extract_strided_slice %33 {offsets = [64, 0], sizes = [16, 256], strides = [1, 1]} : vector<96x256xf32> to vector<16x256xf32>
    %41 = arith.maximumf %39, %40 : vector<16x256xf32>
    %42 = vector.extract_strided_slice %33 {offsets = [80, 0], sizes = [16, 256], strides = [1, 1]} : vector<96x256xf32> to vector<16x256xf32>
    %43 = arith.maximumf %41, %42 : vector<16x256xf32>
    %44 = arith.truncf %38 : vector<16x256xf32> to vector<16x256xbf16>
    %c0_26 = arith.constant 0 : index
    %c0_27 = arith.constant 0 : index
    %45 = vector.load %arg6[%c0_26, %c0_27] : memref<512x256xbf16, #tpu.memory_space<vmem>>, vector<256x256xbf16>
    %cst_28 = arith.constant dense<0.000000e+00> : vector<16x256xf32>
    %46 = tpu.matmul %44, %45, %cst_28 {dimension_numbers = #tpu.dot_dimension_numbers<[1], [0], [0], [1], [0, 0, 1, 1], [], []>} : vector<16x256xbf16>, vector<256x256xbf16>, vector<16x256xf32> -> vector<16x256xf32>
    %47 = arith.truncf %43 : vector<16x256xf32> to vector<16x256xbf16>
    %c256_29 = arith.constant 256 : index
    %c0_30 = arith.constant 0 : index
    %48 = vector.load %arg6[%c256_29, %c0_30] : memref<512x256xbf16, #tpu.memory_space<vmem>>, vector<256x256xbf16>
    %cst_31 = arith.constant dense<0.000000e+00> : vector<16x256xf32>
    %49 = tpu.matmul %47, %48, %cst_31 {dimension_numbers = #tpu.dot_dimension_numbers<[1], [0], [0], [1], [0, 0, 1, 1], [], []>} : vector<16x256xbf16>, vector<256x256xbf16>, vector<16x256xf32> -> vector<16x256xf32>
    %50 = arith.addf %46, %49 : vector<16x256xf32>
    %c0_32 = arith.constant 0 : index
    %c0_33 = arith.constant 0 : index
    %51 = vector.load %arg7[%c0_32, %c0_33] : memref<1x256xf32, #tpu.memory_space<vmem>>, vector<1x256xf32>
    %52 = vector.broadcast %51 : vector<1x256xf32> to vector<16x256xf32>
    %53 = arith.addf %50, %52 : vector<16x256xf32>
    %cst_34 = arith.constant 0.000000e+00 : f32
    %54 = vector.broadcast %cst_34 : f32 to vector<16x256xf32>
    %55 = arith.maximumf %53, %54 : vector<16x256xf32>
    %56 = arith.truncf %55 : vector<16x256xf32> to vector<16x256xbf16>
    %c0_35 = arith.constant 0 : index
    %c0_36 = arith.constant 0 : index
    %57 = vector.load %arg8[%c0_35, %c0_36] : memref<256x256xbf16, #tpu.memory_space<vmem>>, vector<256x256xbf16>
    %cst_37 = arith.constant dense<0.000000e+00> : vector<16x256xf32>
    %58 = tpu.matmul %56, %57, %cst_37 {dimension_numbers = #tpu.dot_dimension_numbers<[1], [0], [0], [1], [0, 0, 1, 1], [], []>} : vector<16x256xbf16>, vector<256x256xbf16>, vector<16x256xf32> -> vector<16x256xf32>
    %c0_38 = arith.constant 0 : index
    %c0_39 = arith.constant 0 : index
    %59 = vector.load %arg9[%c0_38, %c0_39] : memref<1x256xf32, #tpu.memory_space<vmem>>, vector<1x256xf32>
    %60 = vector.broadcast %59 : vector<1x256xf32> to vector<16x256xf32>
    %61 = arith.addf %58, %60 : vector<16x256xf32>
    %cst_40 = arith.constant 0.000000e+00 : f32
    %62 = vector.broadcast %cst_40 : f32 to vector<16x256xf32>
    %63 = arith.maximumf %61, %62 : vector<16x256xf32>
    %64 = arith.truncf %63 : vector<16x256xf32> to vector<16x256xbf16>
    %c0_41 = arith.constant 0 : index
    %c0_42 = arith.constant 0 : index
    %65 = vector.load %arg10[%c0_41, %c0_42] : memref<256x256xbf16, #tpu.memory_space<vmem>>, vector<256x256xbf16>
    %cst_43 = arith.constant dense<0.000000e+00> : vector<16x256xf32>
    %66 = tpu.matmul %64, %65, %cst_43 {dimension_numbers = #tpu.dot_dimension_numbers<[1], [0], [0], [1], [0, 0, 1, 1], [], []>} : vector<16x256xbf16>, vector<256x256xbf16>, vector<16x256xf32> -> vector<16x256xf32>
    %c0_44 = arith.constant 0 : index
    %c0_45 = arith.constant 0 : index
    %67 = vector.load %arg11[%c0_44, %c0_45] : memref<1x256xf32, #tpu.memory_space<vmem>>, vector<1x256xf32>
    %68 = vector.broadcast %67 : vector<1x256xf32> to vector<16x256xf32>
    %69 = arith.addf %66, %68 : vector<16x256xf32>
    %cst_46 = arith.constant 0.000000e+00 : f32
    %70 = vector.broadcast %cst_46 : f32 to vector<16x256xf32>
    %71 = arith.maximumf %69, %70 : vector<16x256xf32>
    %c0_47 = arith.constant 0 : index
    %c0_48 = arith.constant 0 : index
    %72 = vector.load %arg12[%c0_47, %c0_48] : memref<16x256xf32, #tpu.memory_space<vmem>>, vector<16x256xf32>
    tpu.vector_store %arg12[%c0_47, %c0_48], %71 {strides = array<i32>} : memref<16x256xf32, #tpu.memory_space<vmem>>, vector<16x256xf32>,
    return
  }
  func.func @transform_0(%arg0: i32) -> (i32, i32) {
    %c0_i32 = arith.constant 0 : i32
    %c0_i32_0 = arith.constant 0 : i32
    return %arg0, %c0_i32 : i32, i32
  }
  func.func @transform_1(%arg0: i32) -> (i32, i32) {
    %c0_i32 = arith.constant 0 : i32
    %c0_i32_0 = arith.constant 0 : i32
    %c0_i32_1 = arith.constant 0 : i32
    return %c0_i32, %c0_i32_0 : i32, i32
  }
  func.func @transform_2(%arg0: i32) -> (i32, i32) {
    %c0_i32 = arith.constant 0 : i32
    %c0_i32_0 = arith.constant 0 : i32
    %c0_i32_1 = arith.constant 0 : i32
    return %c0_i32, %c0_i32_0 : i32, i32
  }
  func.func @transform_3(%arg0: i32) -> (i32, i32) {
    %c0_i32 = arith.constant 0 : i32
    %c0_i32_0 = arith.constant 0 : i32
    %c0_i32_1 = arith.constant 0 : i32
    return %c0_i32, %c0_i32_0 : i32, i32
  }
  func.func @transform_4(%arg0: i32) -> (i32, i32) {
    %c0_i32 = arith.constant 0 : i32
    %c0_i32_0 = arith.constant 0 : i32
    %c0_i32_1 = arith.constant 0 : i32
    return %c0_i32, %c0_i32_0 : i32, i32
  }
  func.func @transform_5(%arg0: i32) -> (i32, i32) {
    %c0_i32 = arith.constant 0 : i32
    %c0_i32_0 = arith.constant 0 : i32
    %c0_i32_1 = arith.constant 0 : i32
    return %c0_i32, %c0_i32_0 : i32, i32
  }
  func.func @transform_6(%arg0: i32) -> (i32, i32) {
    %c0_i32 = arith.constant 0 : i32
    %c0_i32_0 = arith.constant 0 : i32
    %c0_i32_1 = arith.constant 0 : i32
    return %c0_i32, %c0_i32_0 : i32, i32
  }
  func.func @transform_7(%arg0: i32) -> (i32, i32) {
    %c0_i32 = arith.constant 0 : i32
    %c0_i32_0 = arith.constant 0 : i32
    %c0_i32_1 = arith.constant 0 : i32
    return %c0_i32, %c0_i32_0 : i32, i32
  }
  func.func @transform_8(%arg0: i32) -> (i32, i32) {
    %c0_i32 = arith.constant 0 : i32
    %c0_i32_0 = arith.constant 0 : i32
    %c0_i32_1 = arith.constant 0 : i32
    return %c0_i32, %c0_i32_0 : i32, i32
  }
  func.func @transform_9(%arg0: i32) -> (i32, i32) {
    %c0_i32 = arith.constant 0 : i32
    %c0_i32_0 = arith.constant 0 : i32
    %c0_i32_1 = arith.constant 0 : i32
    return %c0_i32, %c0_i32_0 : i32, i32
  }
  func.func @transform_10(%arg0: i32) -> (i32, i32) {
    %c0_i32 = arith.constant 0 : i32
    %c0_i32_0 = arith.constant 0 : i32
    %c0_i32_1 = arith.constant 0 : i32
    return %c0_i32, %c0_i32_0 : i32, i32
  }
  func.func @transform_11(%arg0: i32) -> (i32, i32) {
    %c0_i32 = arith.constant 0 : i32
    %c0_i32_0 = arith.constant 0 : i32
    return %arg0, %c0_i32 : i32, i32
  }
}

</mosaic_0001>

<bundles_post_ra>
// kernel: tpu_custom_call.1
= control target key start
LH: loop header
LB: loop body
LE: loop exit
PB: predicated region body
PF: predicated region fallthrough
CT: control target
= control target key end

     0   :  { %s4820_s0 = inlined_call_operand.vmem [shape: bf16[192,20], index: 0, kind: input, shape index: {}]   ;;  %s4821_s1 = inlined_call_operand.vmem [shape: bf16[20,768], index: 1, kind: input, shape index: {}]   ;;  %s4822_s2 = inlined_call_operand.vmem [shape: f32[1,256], index: 2, kind: input, shape index: {}]   ;;  %s4823_s3 = inlined_call_operand.hbm [shape: bf16[768,256], index: 3, kind: input, shape index: {}]   ;;  %s4824_s4 = inlined_call_operand.vmem [shape: f32[1,256], index: 4, kind: input, shape index: {}]   ;;  %s4825_s5 = inlined_call_operand.hbm [shape: bf16[512,256], index: 5, kind: input, shape index: {}]   ;;  %s4826_s6 = inlined_call_operand.vmem [shape: f32[1,256], index: 6, kind: input, shape index: {}]   ;;  %s4827_s7 = inlined_call_operand.hbm [shape: bf16[256,256], index: 7, kind: input, shape index: {}]   ;;  %s4828_s8 = inlined_call_operand.vmem [shape: f32[1,256], index: 8, kind: input, shape index: {}]   ;;  %s4829_s9 = inlined_call_operand.hbm [shape: bf16[256,256], index: 9, kind: input, shape index: {}]   ;;  %s4830_s10 = inlined_call_operand.vmem [shape: f32[1,256], index: 10, kind: input, shape index: {}]   ;;  %s4831_s11 = inlined_call_operand.hbm [shape: f32[32,256], index: 11, kind: output, shape index: {}]  }
   0x1   :  { %4846 = sst [smem:[#allocation23_spill]] %s4831_s11 }
   0x2   :  { %16 = vsyncpa [#allocation4], 0 }
   0x3   :  { %17 = vsyncpa [#allocation7], 0 }
   0x4   :  { %18 = vsyncpa [#allocation10], 0 }
   0x5   :  { %19 = vsyncpa [#allocation5], 0 }
   0x6   :  { %21 = vsyncpa [#allocation5 + $0x1], 0  ;;  %s4137_s17 = smov 0   ;;  %s4139_s18 = smov 0  }
   0x7   :  { %s4141_s19 = smov 0   ;;  %s4143_s20 = smov 0  }
   0x8 LB: > { %4847 = sst [smem:[#allocation16_spill]] %s4053_s17  ;;  %s4158_s21 = sadd.s32 4294967295, %s4065_s20   ;;  %s4065_s20 = sphi %s4143_s20, %s4896_s20   ;;  %s4061_s19 = sphi %s4141_s19, %s4901_s19   ;;  %s4057_s18 = sphi %s4139_s18, %s4900_s18   ;;  %s4053_s17 = sphi %s4137_s17, %s4899_s17  }
   0x9   : > { %4848 = sst [smem:[#allocation17_spill]] %s4061_s19  ;;  %s3100_s22 = sadd.s32 4294967294, %s4065_s20  }
   0xa   : > { %4849 = sst [smem:[#allocation18_spill]] %s4065_s20  ;;  %s4162_s23 = sadd.s32 1, %s4065_s20  }
   0xb   : > { %4850 = sst [smem:[#allocation19_spill]] %s4162_s23  ;;  %s270_s24 = sadd.s32 1, %s4061_s19 }
   0xc   : > { %s267_s25 = ssub.s32 %s4065_s20, %s4162_s23  ;;  %p280_p0 = scmp.ne.s32.totalorder %s4061_s19, %s4057_s18 }
   0xd   : > { %p268_p1 = scmp.eq.s32.totalorder %s267_s25, 0  ;;  %p281_p2 = scmp.eq.s32.totalorder %s4158_s21, 1 }
   0xe   : > { %p286_p3 = scmp.ne.s32.totalorder %s4057_s18, %s4053_s17  ;;  %p287_p4 = scmp.eq.s32.totalorder %s3100_s22, 1 }
   0xf   : > { %s4173_s26 = scalar_select %p268_p1, %s4061_s19, %s270_s24  }
  0x10   : > { %p4175_p5 = por %p281_p2, %p280_p0  ;;  %p4179_p6 = por %p287_p4, %p286_p3 }
  0x11   : > { %4851 = sst [smem:[#allocation20_spill]] %s4173_s26  ;;  %p3101_p7 = scmp.ge.s32.totalorder %s4065_s20, 1 }
  0x12   : > { %s4852_s27 = scalar_select %p4175_p5, 1, 0 }
  0x13   : > { %s4853_s28 = scalar_select %p4179_p6, 1, 0 }
  0x14   : > { %p294_p8 = scmp.lt.s32.totalorder %s4065_s20, 3  ;;  %p4835_p9 = scmp.eq.s32.totalorder %s4158_s21, 0 }
  0x15   : > { %4854 = sst [smem:[#allocation21_spill]] %s4853_s28  ;;  %s4067_s30 = smov [#allocation6]  }
  0x16   : > { %p4186_p10 = pnand %p3101_p7, %p294_p8  ;;  %s328_s12 = sshll.u32 %s4067_s30, 4  ;;  %s4192_s12 = int_to_ptr.vmem [resolvable:$true] %s328_s12 }
  0x17   : > { %s4068_s14 = smov [#allocation3]   ;;  %s4069_s16 = smov [#allocation8]  }
  0x18   : > { %s4855_s29 = scalar_select %p4186_p10, 1, 0 }
  0x19   : > { %p3455_p11 = pneg %p4186_p10  ;;  %s312_s15 = sshll.u32 %s4068_s14, 4  ;;  %s4200_s15 = int_to_ptr.vmem [resolvable:$true] %s312_s15 }
  0x1a   : > { %s4202_s22 = sshll.u32 %s4069_s16, 4  ;;  %s3879_s26 = scalar_lea.hbm %s4825_s5, 8192  ;;  %s345_s22 = int_to_ptr.vmem [resolvable:$true] %s4202_s22 }
  0x1b   : > { %p4196_p12 = pnand %p4835_p9, %p3455_p11  ;;  %p3880_p13 = scmp.ne.s32.totalorder %s4825_s5, %s3879_s26 }
  0x1c   : > { %p3886_p3 = scmp.lt.u32.totalorder %s3879_s26, %s4825_s5 }
  0x1d   : > { %p4212_p0 = pneg %p4196_p12 }
  0x1f   : > { %p3882_p1 = pnand %p4212_p0, %p3880_p13 }
  0x21   : > { %p3883_p2 = pneg %p3882_p1 }
  0x23   : > { %p3888_p4 = pnand %p3886_p3, %p3883_p2 }
  0x25   : > { %3891 = shalt.err (!%p3888_p4)
}
  0x26   : > { %s3892_s19 = scalar_lea.vmem %s4192_s12, 8192  ;;  %p3900_p9 = scmp.lt.s32.totalorder %s4192_s12, %s4192_s12 }
  0x27   : > { %p3893_p7 = scmp.ne.s32.totalorder %s4192_s12, %s3892_s19  ;;  %p3901_p6 = scmp.lt.s32.totalorder %s3892_s19, %s3892_s19 }
  0x29   : > { %p3895_p8 = pnand %p3893_p7, %p4212_p0  ;;  %p3902_p13 = por %p3901_p6, %p3900_p9 }
  0x2b   : > { %p3896_p11 = pneg %p3895_p8 }
  0x2d   : > { %p3903_p1 = pnand %p3902_p13, %p3896_p11 }
  0x2f   : > { %3906 = shalt.err (!%p3903_p1)
}
  0x30   : > { %s4070_s24 = smov 128   ;;  %s4071_s26 = smov 8  }
  0x31   : > { %3461 = dma.hbm_to_vmem [thread:$0]  (!%p4196_p12), %s4825_s5, 8192, %s4192_s12, [#allocation7], %s4070_s24, %s4070_s24, %s4071_s26  }
  0x32   : > { %s3907_s19 = scalar_lea.hbm %s4823_s3, 12288 }
  0x33   : > { %p3908_p6 = scmp.ne.s32.totalorder %s4823_s3, %s3907_s19  ;;  %p3914_p3 = scmp.lt.u32.totalorder %s3907_s19, %s4823_s3 }
  0x35   : > { %p3910_p9 = pnand %p3908_p6, %p4212_p0 }
  0x37   : > { %p3911_p2 = pneg %p3910_p9 }
  0x39   : > { %p3916_p4 = pnand %p3914_p3, %p3911_p2 }
  0x3b   : > { %3919 = shalt.err (!%p3916_p4)
}
  0x3c   : > { %s3920_s12 = scalar_lea.vmem %s4200_s15, 12288  ;;  %p3928_p13 = scmp.lt.s32.totalorder %s4200_s15, %s4200_s15 }
  0x3d   : > { %p3921_p7 = scmp.ne.s32.totalorder %s4200_s15, %s3920_s12  ;;  %p3929_p1 = scmp.lt.s32.totalorder %s3920_s12, %s3920_s12 }
  0x3f   : > { %p3923_p8 = pnand %p3921_p7, %p4212_p0  ;;  %p3930_p6 = por %p3929_p1, %p3928_p13 }
  0x41   : > { %p3924_p11 = pneg %p3923_p8 }
  0x43   : > { %p3931_p9 = pnand %p3930_p6, %p3924_p11 }
  0x45   : > { %3934 = shalt.err (!%p3931_p9)
}
  0x46   : > { %3458 = dma.hbm_to_vmem [thread:$0]  (!%p4196_p12), %s4823_s3, 12288, %s4200_s15, [#allocation4], %s4070_s24, %s4070_s24, %s4071_s26  }
  0x47   : > { %s3935_s25 = scalar_lea.hbm %s4827_s7, 4096 }
  0x48   : > { %p3936_p2 = scmp.ne.s32.totalorder %s4827_s7, %s3935_s25  ;;  %p3942_p7 = scmp.lt.u32.totalorder %s3935_s25, %s4827_s7 }
  0x4a   : > { %p3938_p3 = pnand %p3936_p2, %p4212_p0 }
  0x4c   : > { %p3939_p4 = pneg %p3938_p3 }
  0x4e   : > { %p3944_p8 = pnand %p3942_p7, %p3939_p4 }
  0x50   : > { %3947 = shalt.err (!%p3944_p8)
}
  0x51   : > { %s3948_s12 = scalar_lea.vmem %s345_s22, 4096  ;;  %p3956_p6 = scmp.lt.s32.totalorder %s345_s22, %s345_s22 }
  0x52   : > { %p3949_p11 = scmp.ne.s32.totalorder %s345_s22, %s3948_s12  ;;  %p3957_p9 = scmp.lt.s32.totalorder %s3948_s12, %s3948_s12 }
  0x54   : > { %p3951_p13 = pnand %p3949_p11, %p4212_p0  ;;  %p3958_p5 = por %p3957_p9, %p3956_p6 }
  0x56   : > { %p3952_p1 = pneg %p3951_p13 }
  0x58   : > { %p3959_p10 = pnand %p3958_p5, %p3952_p1 }
  0x5a   : > { %3962 = shalt.err (!%p3959_p10)
}
  0x5b   : > { %3464 = dma.hbm_to_vmem [thread:$0]  (!%p4196_p12), %s4827_s7, 4096, %s345_s22, [#allocation7], %s4070_s24, %s4070_s24, %s4071_s26  }
  0x5c   : > { %s4072_s17 = smov [#allocation9]   ;;  %s3963_s30 = scalar_lea.hbm %s4829_s9, 4096 }
  0x5d   : > { %s360_s20 = sshll.u32 %s4072_s17, 4  ;;  %p3964_p5 = scmp.ne.s32.totalorder %s4829_s9, %s3963_s30  ;;  %s361_s20 = int_to_ptr.vmem [resolvable:$true] %s360_s20 }
  0x5e   : > { %p3970_p3 = scmp.lt.u32.totalorder %s3963_s30, %s4829_s9 }
  0x5f   : > { %p3966_p10 = pnand %p3964_p5, %p4212_p0 }
  0x61   : > { %p3967_p2 = pneg %p3966_p10 }
  0x63   : > { %p3972_p4 = pnand %p3970_p3, %p3967_p2 }
  0x65   : > { %3975 = shalt.err (!%p3972_p4)
}
  0x66   : > { %s3976_s22 = scalar_lea.vmem %s361_s20, 4096  ;;  %p3984_p13 = scmp.lt.s32.totalorder %s361_s20, %s361_s20 }
  0x67   : > { %p3977_p7 = scmp.ne.s32.totalorder %s361_s20, %s3976_s22  ;;  %p3985_p1 = scmp.lt.s32.totalorder %s3976_s22, %s3976_s22 }
  0x69   : > { %p3979_p8 = pnand %p3977_p7, %p4212_p0  ;;  %p3986_p6 = por %p3985_p1, %p3984_p13 }
  0x6b   : > { %p3980_p11 = pneg %p3979_p8 }
  0x6d   : > { %p3987_p9 = pnand %p3986_p6, %p3980_p11 }
  0x6f   : > { %3990 = shalt.err (!%p3987_p9)
}
  0x70   : > { %3467 = dma.hbm_to_vmem [thread:$0]  (!%p4196_p12), %s4829_s9, 4096, %s361_s20, [#allocation10], %s4070_s24, %s4070_s24, %s4071_s26  }
  0x71   : > { %p4858_p5 = scmp.ne.s32.totalorder %s4855_s29, 0 }
  0x73   : > { %388 = sbr.rel (%p4858_p5) target bundleno = 1547 (0x60b), region = 64 }
  0x7a   : > { %p4859_p0 = scmp.eq.s32.totalorder %s4158_s21, 0 }
  0x7c   : > { %4036 = dma.done.wait (%p4859_p0), [#allocation4], 12288   ;;  %p4860_p10 = pmov %p4859_p0 }
  0x7d   : > { %p4861_p2 = pmov %p4859_p0 }
  0x7e   : > { %4038 = vsyncadd (%p4860_p10), [#allocation4], 4294955008 }
  0x7f   : > { %4040 = dma.done.wait (%p4861_p2), [#allocation7], 12288   ;;  %p4862_p3 = pmov %p4859_p0 }
  0x80   : > { %p4863_p4 = pmov %p4859_p0 }
  0x81   : > { %4042 = vsyncadd (%p4862_p3), [#allocation7], 4294955008 }
  0x82   : > { %4044 = dma.done.wait (%p4863_p4), [#allocation10], 4096   ;;  %p4864_p12 = pmov %p4859_p0 }
  0x83   : > { %s440_s23 = smul.u32 12, %s4158_s21  ;;  %v4842_v0 = vmov 0   ;;  %v3522_v1 = vld [vmem:[%s4821_s1 + $0x4] ss:$24 sps:$4 sm:$0xff]   ;;  %vm563_vm0 = vcmask 1041408   ;;  %vm544_vm1 = vcmask 162816  }
  0x84   : > { %4046 = vsyncadd (%p4864_p12), [#allocation10], 4294963200  ;;  %614 = vmatprep.mubr.bf16.mxu0 %v4842_v0  ;;  %707 = vmatprep.mubr.bf16.mxu1 %v4842_v0  ;;  %v3524_v2 = vld [vmem:[%s4821_s1 + $0xc] ss:$24 sps:$4 sm:$0xff]   ;;  %v3526_v3 = vld [vmem:[%s4821_s1] ss:$24 sps:$4 sm:$0xff]  }
  0x85   : > { %p441_p7 = scmp.lt.s32.totalorder %s440_s23, 23  ;;  %582 = vmatprep.subr.bf16.mxu0 %v3522_v1  ;;  %v3527_v4 = vld [vmem:[%s4821_s1 + $0x8] ss:$24 sps:$4 sm:$0xff]   ;;  %v466_v5 = vld [vmem:[%s4821_s1 + $0x30] sm:$0x33]  ;;  %675 = vmatprep.subr.bf16.mxu1 %v3524_v2  ;;  %s437_s11 = sand.u32 1, %s4057_s18  }
  0x86   : > { %v3127_v6 = vcombine.high %v466_v5, %v466_v5  ;;  %v467_v7 = vld [vmem:[%s4821_s1 + $0x38] sm:$0x33]  ;;  %v3126_v8 = vcombine.low %v466_v5, %v466_v5  ;;  %583 = vmatpush1.bf16.msra.mxu0 %v3526_v3  ;;  %676 = vmatpush1.bf16.msra.mxu1 %v3527_v4  ;;  %v3535_v12 = vld [vmem:[%s4821_s1 + $0x14] ss:$24 sps:$4 sm:$0xff]   ;;  %v3533_v15 = vld [vmem:[%s4821_s1 + $0x10] ss:$24 sps:$4 sm:$0xff]  }
  0x87   : > { %s4903_s23 = smov (!%p441_p7, %s440_s23), 23  ;;  %v3129_v9 = vcombine.high %v467_v7, %v467_v7  ;;  %v3128_v10 = vcombine.low %v467_v7, %v467_v7  ;;  %v468_v16 = vld [vmem:[%s4821_s1 + $0x40] sm:$0x33]  ;;  %v3543_v19 = vld [vmem:[#allocation3 + $0x100] ss:$8 sps:$4 sm:$0xff]   ;;  %s3384_s24 = sshll.u32 %s4158_s21, 9 }
  0x88   : > { %s3113_s29 = sshll.u32 %s4903_s23, 2  ;;  %3132 = vmatprep.subr.msk.bf16.mxu0 %vm563_vm0, %v3127_v6  ;;  %v565_v11 = vsel %vm563_vm0, %v3126_v8, 0  ;;  %v3131_v17 = vcombine.high %v468_v16, %v468_v16  ;;  %v3130_v18 = vcombine.low %v468_v16, %v468_v16  ;;  %v3545_v20 = vld [vmem:[#allocation3 + $0x104] ss:$8 sps:$4 sm:$0xff]   ;;  %v3548_v27 = vld [vmem:[#allocation3 + $0x114] ss:$8 sps:$4 sm:$0xff]  }
  0x89   : > { %s4340_s22 = scalar_lea.vmem %s4820_s0, %s3113_s29  ;;  %3139 = vmatprep.subr.msk.bf16.mxu1 %vm563_vm0, %v3129_v9  ;;  %v571_v13 = vsel %vm563_vm0, %v3128_v10, 0  ;;  %v3546_v28 = vld [vmem:[#allocation3 + $0x110] ss:$8 sps:$4 sm:$0xff]   ;;  %v3551_v29 = vld [vmem:[#allocation3 + $0x124] ss:$8 sps:$4 sm:$0xff]   ;;  %s3112_s23 = sshll.u32 %s437_s11, 5 }
  0x8a   : > { %v3532_v14 = vld [vmem:[%s4340_s22] sm:$0xff]   ;;  %585 = vmatpush1.bf16.msra.mxu0 %v565_v11  ;;  %678 = vmatpush1.bf16.msra.mxu1 %v571_v13  ;;  %v3536_v21 = vld [vmem:[%s4340_s22 + $0x8] sm:$0xff]   ;;  %v577_v22 = vsel %vm563_vm0, %v3130_v18, 0  ;;  %v3537_v23 = vld [vmem:[%s4340_s22 + $0x10] sm:$0xff]   ;;  %s439_s29 = scalar_lea.vmem [#allocation11], %s3112_s23  ;;  %s4889_s20 = sld [smem:[#allocation23_spill]] }
  0x8b   : > { %768 = vmatprep.subr.bf16.mxu0 %v3535_v12  ;;  %1235 = vmatprep.subr.bf16.mxu1 %v3545_v20  ;;  %v3538_v24 = vld [vmem:[%s4340_s22 + $0x18] sm:$0xff]   ;;  %v3541_v25 = vld [vmem:[%s4340_s22 + $0x20] sm:$0xff]   ;;  %v3542_v26 = vld [vmem:[%s4340_s22 + $0x28] sm:$0xff]   ;;  %s2997_s13 = sshll.u32 %s439_s29, 4  ;;  %s4779_s21 = scalar_lea.sflag [#allocation5], %s437_s11  ;;  %s4772_s13 = int_to_ptr.vmem [resolvable:$true] %s2997_s13 }
  0x8c   : > { %v3549_v30 = vld [vmem:[#allocation3 + $0x120] ss:$8 sps:$4 sm:$0xff]   ;;  %v3554_v31 = vld [vmem:[#allocation3 + $0x134] ss:$8 sps:$4 sm:$0xff]   ;;  %v3552_v32 = vld [vmem:[#allocation3 + $0x130] ss:$8 sps:$4 sm:$0xff]  }
  0x8d   : > { %3133 = vmatmul.mubr.msk.bf16.vlgmr.msra.gmra.mrb[0].mxu0 %vm544_vm1, %v3532_v14  ;;  %3140 = vmatmul.mubr.msk.bf16.vlgmr.msra.gmra.mrb[0].mxu1 %vm544_vm1, %v3532_v14  ;;  %v3557_v33 = vld [vmem:[#allocation3 + $0x144] ss:$8 sps:$4 sm:$0xff]   ;;  %v3555_v34 = vld [vmem:[#allocation3 + $0x140] ss:$8 sps:$4 sm:$0xff]   ;;  %v3560_v35 = vld [vmem:[#allocation3 + $0x154] ss:$8 sps:$4 sm:$0xff]  }
  0x8e   : > { %769 = vmatpush1.bf16.msra.mxu0 %v3533_v15  ;;  %624 = vmatprep.mubr.bf16.mxu0 %v4842_v0  ;;  %v3558_v36 = vld [vmem:[#allocation3 + $0x150] ss:$8 sps:$4 sm:$0xff]   ;;  %v3563_v37 = vld [vmem:[#allocation3 + $0x164] ss:$8 sps:$4 sm:$0xff]   ;;  %v3561_v38 = vld [vmem:[#allocation3 + $0x160] ss:$8 sps:$4 sm:$0xff]  }
  0x8f   : > { %717 = vmatprep.mubr.bf16.mxu1 %v4842_v0  ;;  %3146 = vmatprep.subr.msk.bf16.mxu0 %vm563_vm0, %v3131_v17  ;;  %v3566_v39 = vld [vmem:[#allocation3 + $0x174] ss:$8 sps:$4 sm:$0xff]   ;;  %v3564_v40 = vld [vmem:[#allocation3 + $0x170] ss:$8 sps:$4 sm:$0xff]   ;;  %v3569_v41 = vld [vmem:[#allocation3 + $0x184] ss:$8 sps:$4 sm:$0xff]  }
  0x90   : > { %1236 = vmatpush1.bf16.msra.mxu1 %v3543_v19  ;;  %v3567_v42 = vld [vmem:[#allocation3 + $0x180] ss:$8 sps:$4 sm:$0xff]   ;;  %v3572_v43 = vld [vmem:[#allocation3 + $0x194] ss:$8 sps:$4 sm:$0xff]   ;;  %v3570_v44 = vld [vmem:[#allocation3 + $0x190] ss:$8 sps:$4 sm:$0xff]   ;;  %s4890_s28 = smov %s4889_s20  ;;  %s4777_s25 = scalar_lea.hbm %s4889_s20, %s3384_s24 }
  0x91   : > { %1237 = vmatprep.subr.bf16.mxu1 %v3548_v27  ;;  %v3575_v45 = vld [vmem:[#allocation3 + $0x1a4] ss:$8 sps:$4 sm:$0xff]   ;;  %v3573_v46 = vld [vmem:[#allocation3 + $0x1a0] ss:$8 sps:$4 sm:$0xff]   ;;  %v3578_v47 = vld [vmem:[#allocation3 + $0x1b4] ss:$8 sps:$4 sm:$0xff]  }
  0x92   : > { %771 = vmatpush1.bf16.msra.mxu0 %v577_v22  ;;  %v3576_v48 = vld [vmem:[#allocation3 + $0x1b0] ss:$8 sps:$4 sm:$0xff]   ;;  %v3581_v49 = vld [vmem:[#allocation3 + $0x1c4] ss:$8 sps:$4 sm:$0xff]   ;;  %v3579_v50 = vld [vmem:[#allocation3 + $0x1c0] ss:$8 sps:$4 sm:$0xff]  }
  0x93   : > { %v3584_v51 = vld [vmem:[#allocation3 + $0x1d4] ss:$8 sps:$4 sm:$0xff]   ;;  %v3582_v52 = vld [vmem:[#allocation3 + $0x1d0] ss:$8 sps:$4 sm:$0xff]   ;;  %v3587_v53 = vld [vmem:[#allocation3 + $0x1e4] ss:$8 sps:$4 sm:$0xff]  }
  0x94   : > { %1238 = vmatpush1.bf16.msra.mxu1 %v3546_v28  ;;  %v3585_v54 = vld [vmem:[#allocation3 + $0x1e0] ss:$8 sps:$4 sm:$0xff]   ;;  %v3590_v55 = vld [vmem:[#allocation3 + $0x1f4] ss:$8 sps:$4 sm:$0xff]   ;;  %v3588_v56 = vld [vmem:[#allocation3 + $0x1f0] ss:$8 sps:$4 sm:$0xff]  }
  0x95   : > { %3134 = vmatmul.mubr.msk.bf16.gmra.mrb[4].mxu0 %vm544_vm1, %v3536_v21  ;;  %3141 = vmatmul.mubr.msk.bf16.gmra.mrb[4].mxu1 %vm544_vm1, %v3536_v21  ;;  %v3593_v57 = vld [vmem:[#allocation3 + $0x4] ss:$8 sps:$4 sm:$0xff]   ;;  %s3991_s30 = scalar_lea.vmem %s4772_s13, 512  ;;  %p4891_p11 = scmp.ne.s32.totalorder %s4852_s27, 0 }
  0x96   : > { %634 = vmatprep.mubr.bf16.mxu0 %v4842_v0  ;;  %727 = vmatprep.mubr.bf16.mxu1 %v4842_v0  ;;  %p3992_p8 = scmp.ne.s32.totalorder %s4772_s13, %s3991_s30  ;;  %s4074_s14 = smov [#allocation11]  }
  0x97   : > { %1239 = vmatprep.subr.bf16.mxu1 %v3551_v29  ;;  %s3995_s16 = sshll.u32 %s4074_s14, 4  ;;  %s3996_s16 = int_to_ptr.vmem [resolvable:$false] %s3995_s16 }
  0x98   : > { %1240 = vmatpush1.bf16.msra.mxu1 %v3549_v30  ;;  %p3993_p13 = pnand %p3992_p8, %p4891_p11  ;;  %s3997_s19 = scalar_lea.vmem %s3996_s16, 1024 }
  0x99   : > { %1241 = vmatprep.subr.bf16.mxu1 %v3554_v31  ;;  %p3998_p6 = scmp.lt.s32.totalorder %s4772_s13, %s3996_s16  ;;  %p3999_p9 = scmp.lt.s32.totalorder %s3997_s19, %s3991_s30 }
  0x9a   : > { %p3994_p1 = pneg %p3993_p13 }
  0x9b   : > { %p4000_p5 = por %p3999_p9, %p3998_p6 }
  0x9c   : > { %1242 = vmatpush1.bf16.msra.mxu1 %v3552_v32 }
  0x9d   : > { %3135 = vmatmul.mubr.msk.bf16.gmra.mrb[8].mxu0 %vm544_vm1, %v3537_v23  ;;  %3142 = vmatmul.mubr.msk.bf16.gmra.mrb[8].mxu1 %vm544_vm1, %v3537_v23  ;;  %p4001_p0 = pnand %p4000_p5, %p3994_p1 }
  0x9e   : > { %644 = vmatprep.mubr.bf16.mxu0 %v4842_v0  ;;  %737 = vmatprep.mubr.bf16.mxu1 %v4842_v0 }
  0x9f   : > { %1243 = vmatprep.subr.bf16.mxu1 %v3557_v33 }
  0xa0   : > { %1244 = vmatpush1.bf16.msra.mxu1 %v3555_v34 }
  0xa1   : > { %1245 = vmatprep.subr.bf16.mxu1 %v3560_v35 }
  0xa4   : > { %1246 = vmatpush1.bf16.msra.mxu1 %v3558_v36 }
  0xa5   : > { %3136 = vmatmul.mubr.msk.bf16.gmra.mrb[12].mxu0 %vm544_vm1, %v3538_v24  ;;  %3143 = vmatmul.mubr.msk.bf16.gmra.mrb[12].mxu1 %vm544_vm1, %v3538_v24 }
  0xa6   : > { %654 = vmatprep.mubr.bf16.mxu0 %v4842_v0  ;;  %747 = vmatprep.mubr.bf16.mxu1 %v4842_v0 }
  0xa7   : > { %1247 = vmatprep.subr.bf16.mxu1 %v3563_v37 }
  0xa8   : > { %1248 = vmatpush1.bf16.msra.mxu1 %v3561_v38 }
  0xa9   : > { %1249 = vmatprep.subr.bf16.mxu1 %v3566_v39 }
  0xac   : > { %1250 = vmatpush1.bf16.msra.mxu1 %v3564_v40 }
  0xad   : > { %3137 = vmatmul.mubr.msk.bf16.gmra.mrb[16].mxu0 %vm544_vm1, %v3541_v25  ;;  %3144 = vmatmul.mubr.msk.bf16.gmra.mrb[16].mxu1 %vm544_vm1, %v3541_v25 }
  0xae   : > { %664 = vmatprep.mubr.bf16.mxu0 %v4842_v0  ;;  %757 = vmatprep.mubr.bf16.mxu1 %v4842_v0 }
  0xaf   : > { %1251 = vmatprep.subr.bf16.mxu1 %v3569_v41 }
  0xb0   : > { %1252 = vmatpush1.bf16.msra.mxu1 %v3567_v42 }
  0xb1   : > { %1253 = vmatprep.subr.bf16.mxu1 %v3572_v43 }
  0xb4   : > { %1254 = vmatpush1.bf16.msra.mxu1 %v3570_v44 }
  0xb5   : > { %3138 = vmatmul.mubr.msk.bf16.gmra.mrb[20].mxu0 %vm544_vm1, %v3542_v26  ;;  %3145 = vmatmul.mubr.msk.bf16.gmra.mrb[20].mxu1 %vm544_vm1, %v3542_v26 }
  0xb6   : > { %800 = vmatprep.mubr.bf16.mxu0 %v4842_v0  ;;  %1255 = vmatprep.subr.bf16.mxu1 %v3575_v45 }
  0xb8   : > { %1256 = vmatpush1.bf16.msra.mxu1 %v3573_v46 }
  0xb9   : > { %1257 = vmatprep.subr.bf16.mxu1 %v3578_v47 }
  0xbc   : > { %1258 = vmatpush1.bf16.msra.mxu1 %v3576_v48 }
  0xbd   : > { %3147 = vmatmul.mubr.msk.bf16.vlgmr.msra.gmra.mrb[24].mxu0 %vm544_vm1, %v3532_v14  ;;  %1259 = vmatprep.subr.bf16.mxu1 %v3581_v49 }
  0xbe   : > { %810 = vmatprep.mubr.bf16.mxu0 %v4842_v0 }
  0xc0   : > { %1260 = vmatpush1.bf16.msra.mxu1 %v3579_v50 }
  0xc1   : > { %1261 = vmatprep.subr.bf16.mxu1 %v3584_v51  ;;  %v909_v51 = vld [vmem:[%s4822_s2] sm:$0x3] }
  0xc4   : > { %1262 = vmatpush1.bf16.msra.mxu1 %v3582_v52 }
  0xc5   : > { %3148 = vmatmul.mubr.msk.bf16.gmra.mrb[28].mxu0 %vm544_vm1, %v3536_v21  ;;  %1263 = vmatprep.subr.bf16.mxu1 %v3587_v53 }
  0xc6   : > { %820 = vmatprep.mubr.bf16.mxu0 %v4842_v0 }
  0xc8   : > { %1264 = vmatpush1.bf16.msra.mxu1 %v3585_v54  ;;  %v911_v54 = vlaneseq }
  0xc9   : > { %1265 = vmatprep.subr.bf16.mxu1 %v3590_v55 }
  0xcc   : > { %1266 = vmatpush1.bf16.msra.mxu1 %v3588_v56  ;;  %v912_v56 = vshrl.u32 %v911_v54, 7 }
  0xcd   : > { %3149 = vmatmul.mubr.msk.bf16.gmra.mrb[32].mxu0 %vm544_vm1, %v3537_v23  ;;  %1488 = vmatprep.subr.bf16.mxu1 %v3593_v57 }
  0xce   : > { %830 = vmatprep.mubr.bf16.mxu0 %v4842_v0  ;;  %v4542_v30 = vsub.s32 0, %v912_v56  ;;  %v4549_v27 = vsub.s32 1, %v912_v56 }
  0xd0   : > { %4865 = vst [vmem:[#allocation22_spill] sm:$0xff] %v4549_v27  ;;  %v4555_v54 = vrot.slane %v909_v51, %v4549_v27 }
  0xd5   : > { %3150 = vmatmul.mubr.msk.bf16.gmra.mrb[36].mxu0 %vm544_vm1, %v3538_v24  ;;  %v4552_v24 = vrot.slane %v909_v51, %v4542_v30 }
  0xd6   : > { %840 = vmatprep.mubr.bf16.mxu0 %v4842_v0 }
  0xdd   : > { %3151 = vmatmul.mubr.msk.bf16.gmra.mrb[40].mxu0 %vm544_vm1, %v3541_v25 }
  0xde   : > { %850 = vmatprep.mubr.bf16.mxu0 %v4842_v0 }
  0xe5   : > { %3152 = vmatmul.mubr.msk.bf16.gmra.mrb[44].mxu0 %vm544_vm1, %v3542_v26 }
 0x160   : > { %v4400_v58 = vpop.f32.mrb[0].mxu0  ;;  %v4402_v59 = vpop.f32.mrb[0].mxu1 }
 0x161   : > { %v861_v60 = vmax.f32 %v4400_v58, %v4402_v59  ;;  %v4406_v61 = vpop.f32.mrb[1].mxu0  ;;  %v4408_v62 = vpop.f32.mrb[1].mxu1 }
 0x162   : > { %v862_v63 = vmax.f32 %v4406_v61, %v4408_v62  ;;  %v4412_v1 = vpop.f32.mrb[2].mxu0  ;;  %v4414_v2 = vpop.f32.mrb[2].mxu1 }
 0x163   : > { %v863_v3 = vmax.f32 %v4412_v1, %v4414_v2  ;;  %v4418_v4 = vpop.f32.mrb[3].mxu0  ;;  %v4420_v5 = vpop.f32.mrb[3].mxu1 }
 0x164   : > { %v4866_v27 = vmax.f32 %v4418_v4, %v4420_v5 }
 0x168   : > { %v4424_v7 = vpop.f32.mrb[4].mxu0  ;;  %v4426_v8 = vpop.f32.mrb[4].mxu1 }
 0x169   : > { %v4430_v10 = vpop.f32.mrb[5].mxu0  ;;  %v4432_v11 = vpop.f32.mrb[5].mxu1  ;;  %v4867_v1 = vmax.f32 %v4424_v7, %v4426_v8 }
 0x16a   : > { %v4436_v13 = vpop.f32.mrb[6].mxu0  ;;  %v4438_v14 = vpop.f32.mrb[6].mxu1  ;;  %v4868_v4 = vmax.f32 %v4430_v10, %v4432_v11 }
 0x16b   : > { %v4442_v16 = vpop.f32.mrb[7].mxu0  ;;  %v4444_v17 = vpop.f32.mrb[7].mxu1 }
 0x16c   : > { %v4870_v8 = vmax.f32 %v4442_v16, %v4444_v17 }
 0x170   : > { %v4448_v19 = vpop.f32.mrb[8].mxu0  ;;  %v4450_v20 = vpop.f32.mrb[8].mxu1 }
 0x171   : > { %v4454_v22 = vpop.f32.mrb[9].mxu0  ;;  %v4456_v23 = vpop.f32.mrb[9].mxu1  ;;  %v4871_v16 = vmax.f32 %v4448_v19, %v4450_v20  ;;  %v3602_v20 = vld [vmem:[#allocation3 + $0x34] ss:$8 sps:$4 sm:$0xff]  }
 0x172   : > { %v4460_v25 = vpop.f32.mrb[10].mxu0  ;;  %v4462_v26 = vpop.f32.mrb[10].mxu1 }
 0x173   : > { %v4466_v28 = vpop.f32.mrb[11].mxu0  ;;  %v4468_v29 = vpop.f32.mrb[11].mxu1 }
 0x178   : > { %v4472_v31 = vpop.f32.mrb[12].mxu0  ;;  %v4474_v32 = vpop.f32.mrb[12].mxu1 }
 0x179   : > { %v4478_v34 = vpop.f32.mrb[13].mxu0  ;;  %v4480_v35 = vpop.f32.mrb[13].mxu1 }
 0x17a   : > { %v4484_v37 = vpop.f32.mrb[14].mxu0  ;;  %v4486_v38 = vpop.f32.mrb[14].mxu1 }
 0x17b   : > { %v4490_v40 = vpop.f32.mrb[15].mxu0  ;;  %v4492_v41 = vpop.f32.mrb[15].mxu1 }
 0x180   : > { %v4496_v43 = vpop.f32.mrb[16].mxu0  ;;  %v4498_v44 = vpop.f32.mrb[16].mxu1 }
 0x181   : > { %v4502_v46 = vpop.f32.mrb[17].mxu0  ;;  %v4504_v47 = vpop.f32.mrb[17].mxu1 }
 0x182   : > { %v4508_v49 = vpop.f32.mrb[18].mxu0  ;;  %v4510_v50 = vpop.f32.mrb[18].mxu1 }
 0x183   : > { %v4514_v52 = vpop.f32.mrb[19].mxu0  ;;  %v4516_v53 = vpop.f32.mrb[19].mxu1 }
 0x188   : > { %v4520_v57 = vpop.f32.mrb[20].mxu0  ;;  %v4522_v0 = vpop.f32.mrb[20].mxu1 }
 0x189   : > { %v4526_v45 = vpop.f32.mrb[21].mxu0  ;;  %v4528_v42 = vpop.f32.mrb[21].mxu1 }
 0x18a   : > { %v4532_v39 = vpop.f32.mrb[22].mxu0  ;;  %v4534_v36 = vpop.f32.mrb[22].mxu1 }
 0x18b   : > { %v4538_v55 = vpop.f32.mrb[23].mxu0  ;;  %v4540_v33 = vpop.f32.mrb[23].mxu1 }
 0x190   : > { %v802_v21 = vpop.f32.mrb[24].mxu0 }
 0x191   : > { %v885_v18 = vmax.f32 %v861_v60, %v802_v21  ;;  %v804_v15 = vpop.f32.mrb[25].mxu0 }
 0x192   : > { %v886_v48 = vmax.f32 %v862_v63, %v804_v15  ;;  %v806_v12 = vpop.f32.mrb[26].mxu0 }
 0x193   : > { %v921_v56 = vadd.f32 %v4552_v24, %v885_v18  ;;  %v887_v9 = vmax.f32 %v863_v3, %v806_v12  ;;  %v808_v6 = vpop.f32.mrb[27].mxu0  ;;  %v3591_v12 = vld [vmem:[#allocation3] ss:$8 sps:$4 sm:$0xff]  }
 0x194   : > { %v922_v51 = vadd.f32 %v4555_v54, %v886_v48  ;;  %v888_v58 = vmax.f32 %v4866_v27, %v808_v6  ;;  %v4869_v48 = vmax.f32 %v4436_v13, %v4438_v14 }
 0x195   : > { %v923_v59 = vadd.f32 %v4552_v24, %v887_v9  ;;  %v945_v61 = vmax.f32 %v921_v56, 0.0 }
 0x196   : > { %v924_v60 = vadd.f32 %v4555_v54, %v888_v58  ;;  %v946_v63 = vmax.f32 %v922_v51, 0.0  ;;  %v3596_v58 = vld [vmem:[#allocation3 + $0x14] ss:$8 sps:$4 sm:$0xff]  }
 0x197   : > { %v947_v62 = vmax.f32 %v923_v59, 0.0 }
 0x198   : > { %v948_v15 = vmax.f32 %v924_v60, 0.0  ;;  %v812_v18 = vpop.f32.mrb[28].mxu0  ;;  %v3594_v60 = vld [vmem:[#allocation3 + $0x10] ss:$8 sps:$4 sm:$0xff]  }
 0x199   : > { %v4573_v21 = vpack.c.bf16 %v947_v62, %v945_v61  ;;  %v889_v2 = vmax.f32 %v4867_v1, %v812_v18  ;;  %v814_v3 = vpop.f32.mrb[29].mxu0  ;;  %v3599_v61 = vld [vmem:[#allocation3 + $0x24] ss:$8 sps:$4 sm:$0xff]  }
 0x19a   : > { %v890_v5 = vmax.f32 %v4868_v4, %v814_v3  ;;  %v816_v6 = vpop.f32.mrb[30].mxu0  ;;  %v4581_v9 = vpack.c.bf16 %v948_v15, %v946_v63 }
 0x19b   : > { %v925_v27 = vadd.f32 %v4552_v24, %v889_v2  ;;  %v891_v56 = vmax.f32 %v4869_v48, %v816_v6  ;;  %v818_v51 = vpop.f32.mrb[31].mxu0  ;;  %v4872_v2 = vmax.f32 %v4454_v22, %v4456_v23  ;;  %v3597_v6 = vld [vmem:[#allocation3 + $0x20] ss:$8 sps:$4 sm:$0xff]   ;;  %v4874_v22 = vmax.f32 %v4466_v28, %v4468_v29 }
 0x19c   : > { %v926_v7 = vadd.f32 %v4555_v54, %v890_v5  ;;  %v892_v59 = vmax.f32 %v4870_v8, %v818_v51  ;;  %1267 = vmatprep.mubr.bf16.mxu1 %v4581_v9  ;;  %v3605_v8 = vld [vmem:[#allocation3 + $0x44] ss:$8 sps:$4 sm:$0xff]   ;;  %v4875_v28 = vmax.f32 %v4472_v31, %v4474_v32  ;;  %v3608_v32 = vld [vmem:[#allocation3 + $0x54] ss:$8 sps:$4 sm:$0xff]  }
 0x19d   : > { %v927_v10 = vadd.f32 %v4552_v24, %v891_v56  ;;  %1268 = vmatmul.mubr.bf16.vlgmr.msra.gmra.mrb[24].mxu1 %v4573_v21  ;;  %v949_v13 = vmax.f32 %v925_v27, 0.0  ;;  %v4873_v27 = vmax.f32 %v4460_v25, %v4462_v26  ;;  %v3600_v25 = vld [vmem:[#allocation3 + $0x30] ss:$8 sps:$4 sm:$0xff]  }
 0x19e   : > { %v928_v11 = vadd.f32 %v4555_v54, %v892_v59  ;;  %1489 = vmatpush1.bf16.msra.mxu1 %v3591_v12  ;;  %v950_v62 = vmax.f32 %v926_v7, 0.0 }
 0x19f   : > { %v951_v14 = vmax.f32 %v927_v10, 0.0  ;;  %1490 = vmatprep.subr.bf16.mxu1 %v3596_v58 }
 0x1a0   : > { %v952_v63 = vmax.f32 %v928_v11, 0.0  ;;  %v822_v15 = vpop.f32.mrb[32].mxu0 }
 0x1a1   : > { %v893_v17 = vmax.f32 %v4871_v16, %v822_v15  ;;  %v824_v18 = vpop.f32.mrb[33].mxu0  ;;  %v4598_v1 = vpack.c.bf16 %v951_v14, %v949_v13  ;;  %v4876_v14 = vmax.f32 %v4478_v34, %v4480_v35  ;;  %v3603_v15 = vld [vmem:[#allocation3 + $0x40] ss:$8 sps:$4 sm:$0xff]   ;;  %v4878_v34 = vmax.f32 %v4490_v40, %v4492_v41 }
 0x1a2   : > { %v894_v3 = vmax.f32 %v4872_v2, %v824_v18  ;;  %1491 = vmatpush1.bf16.msra.mxu1 %v3594_v60  ;;  %v826_v4 = vpop.f32.mrb[34].mxu0  ;;  %v4603_v5 = vpack.c.bf16 %v952_v63, %v950_v62  ;;  %v4879_v40 = vmax.f32 %v4496_v43, %v4498_v44  ;;  %v3614_v44 = vld [vmem:[#allocation3 + $0x74] ss:$8 sps:$4 sm:$0xff]  }
 0x1a3   : > { %v929_v12 = vadd.f32 %v4552_v24, %v893_v17  ;;  %v895_v48 = vmax.f32 %v4873_v27, %v826_v4  ;;  %v828_v19 = vpop.f32.mrb[35].mxu0  ;;  %1492 = vmatprep.subr.bf16.mxu1 %v3599_v61  ;;  %v4877_v17 = vmax.f32 %v4484_v37, %v4486_v38  ;;  %v3606_v37 = vld [vmem:[#allocation3 + $0x50] ss:$8 sps:$4 sm:$0xff]  }
 0x1a4   : > { %v930_v56 = vadd.f32 %v4555_v54, %v894_v3  ;;  %v896_v23 = vmax.f32 %v4874_v22, %v828_v19  ;;  %1277 = vmatprep.mubr.bf16.mxu1 %v4603_v5  ;;  %v4880_v22 = vmax.f32 %v4502_v46, %v4504_v47  ;;  %v4882_v46 = vmax.f32 %v4514_v52, %v4516_v53 }
 0x1a5   : > { %v931_v51 = vadd.f32 %v4552_v24, %v895_v48  ;;  %1278 = vmatmul.mubr.bf16.gmra.mrb[28].mxu1 %v4598_v1  ;;  %v953_v26 = vmax.f32 %v929_v12, 0.0  ;;  %v3611_v12 = vld [vmem:[#allocation3 + $0x64] ss:$8 sps:$4 sm:$0xff]   ;;  %v4883_v52 = vmax.f32 %v4520_v57, %v4522_v0  ;;  %v3620_v57 = vld [vmem:[#allocation3 + $0x94] ss:$8 sps:$4 sm:$0xff]  }
 0x1a6   : > { %v932_v58 = vadd.f32 %v4555_v54, %v896_v23  ;;  %1493 = vmatpush1.bf16.msra.mxu1 %v3597_v6  ;;  %v954_v59 = vmax.f32 %v930_v56, 0.0 }
 0x1a7   : > { %v955_v7 = vmax.f32 %v931_v51, 0.0  ;;  %1494 = vmatprep.subr.bf16.mxu1 %v3602_v20 }
 0x1a8   : > { %v956_v10 = vmax.f32 %v932_v58, 0.0  ;;  %v832_v11 = vpop.f32.mrb[36].mxu0 }
 0x1a9   : > { %v897_v29 = vmax.f32 %v4875_v28, %v832_v11  ;;  %v834_v60 = vpop.f32.mrb[37].mxu0  ;;  %v4620_v13 = vpack.c.bf16 %v955_v7, %v953_v26  ;;  %v4881_v7 = vmax.f32 %v4508_v49, %v4510_v50  ;;  %v3612_v49 = vld [vmem:[#allocation3 + $0x70] ss:$8 sps:$4 sm:$0xff]  }
 0x1aa   : > { %v898_v61 = vmax.f32 %v4876_v14, %v834_v60  ;;  %1495 = vmatpush1.bf16.msra.mxu1 %v3600_v25  ;;  %v836_v62 = vpop.f32.mrb[38].mxu0  ;;  %v4625_v63 = vpack.c.bf16 %v956_v10, %v954_v59  ;;  %v3609_v25 = vld [vmem:[#allocation3 + $0x60] ss:$8 sps:$4 sm:$0xff]  }
 0x1ab   : > { %v933_v16 = vadd.f32 %v4552_v24, %v897_v29  ;;  %v899_v18 = vmax.f32 %v4877_v17, %v836_v62  ;;  %v838_v31 = vpop.f32.mrb[39].mxu0  ;;  %1496 = vmatprep.subr.bf16.mxu1 %v3605_v8  ;;  %v3617_v29 = vld [vmem:[#allocation3 + $0x84] ss:$8 sps:$4 sm:$0xff]  }
 0x1ac   : > { %v934_v2 = vadd.f32 %v4555_v54, %v898_v61  ;;  %v900_v35 = vmax.f32 %v4878_v34, %v838_v31  ;;  %1287 = vmatprep.mubr.bf16.mxu1 %v4625_v63  ;;  %v4885_v34 = vmax.f32 %v4532_v39, %v4534_v36  ;;  %v3618_v36 = vld [vmem:[#allocation3 + $0x90] ss:$8 sps:$4 sm:$0xff]  }
 0x1ad   : > { %v935_v3 = vadd.f32 %v4552_v24, %v899_v18  ;;  %1288 = vmatmul.mubr.bf16.gmra.mrb[32].mxu1 %v4620_v13  ;;  %v957_v38 = vmax.f32 %v933_v16, 0.0  ;;  %v4884_v16 = vmax.f32 %v4526_v45, %v4528_v42  ;;  %v4886_v42 = vmax.f32 %v4538_v55, %v4540_v33  ;;  %v3621_v55 = vld [vmem:[#allocation3 + $0xa0] ss:$8 sps:$4 sm:$0xff]  }
 0x1ae   : > { %v936_v4 = vadd.f32 %v4555_v54, %v900_v35  ;;  %1497 = vmatpush1.bf16.msra.mxu1 %v3603_v15  ;;  %v958_v27 = vmax.f32 %v934_v2, 0.0 }
 0x1af   : > { %v959_v6 = vmax.f32 %v935_v3, 0.0  ;;  %1498 = vmatprep.subr.bf16.mxu1 %v3608_v32  ;;  %v3615_v32 = vld [vmem:[#allocation3 + $0x80] ss:$8 sps:$4 sm:$0xff]  }
 0x1b0   : > { %v960_v48 = vmax.f32 %v936_v4, 0.0  ;;  %v842_v19 = vpop.f32.mrb[40].mxu0 }
 0x1b1   : > { %v901_v41 = vmax.f32 %v4879_v40, %v842_v19  ;;  %v844_v20 = vpop.f32.mrb[41].mxu0  ;;  %v4642_v56 = vpack.c.bf16 %v959_v6, %v957_v38  ;;  %v3623_v6 = vld [vmem:[#allocation3 + $0xa4] ss:$8 sps:$4 sm:$0xff]   ;;  %v3624_v40 = vld [vmem:[#allocation3 + $0xb0] ss:$8 sps:$4 sm:$0xff]  }
 0x1b2   : > { %v902_v23 = vmax.f32 %v4880_v22, %v844_v20  ;;  %1499 = vmatpush1.bf16.msra.mxu1 %v3606_v37  ;;  %v846_v51 = vpop.f32.mrb[42].mxu0  ;;  %v4647_v58 = vpack.c.bf16 %v960_v48, %v958_v27  ;;  %v3689_v19 = vld [vmem:[#allocation6 + $0x104] ss:$8 sps:$4 sm:$0xff]   ;;  %v3692_v20 = vld [vmem:[#allocation6 + $0x114] ss:$8 sps:$4 sm:$0xff]  }
 0x1b3   : > { %v937_v26 = vadd.f32 %v4552_v24, %v901_v41  ;;  %v903_v8 = vmax.f32 %v4881_v7, %v846_v51  ;;  %v848_v43 = vpop.f32.mrb[43].mxu0  ;;  %1500 = vmatprep.subr.bf16.mxu1 %v3611_v12  ;;  %v4887_v41 = vmov 0   ;;  %v3629_v22 = vld [vmem:[#allocation3 + $0xc4] ss:$8 sps:$4 sm:$0xff]   ;;  %2206 = vmatprep.subr.bf16.mxu0 %v3689_v19  ;;  %v3693_v7 = vld [vmem:[#allocation6 + $0x120] ss:$8 sps:$4 sm:$0xff]  }
 0x1b4   : > { %v938_v59 = vadd.f32 %v4555_v54, %v902_v23  ;;  %v904_v47 = vmax.f32 %v4882_v46, %v848_v43  ;;  %1297 = vmatprep.mubr.bf16.mxu1 %v4647_v58  ;;  %v3690_v23 = vld [vmem:[#allocation6 + $0x110] ss:$8 sps:$4 sm:$0xff]   ;;  %v3695_v51 = vld [vmem:[#allocation6 + $0x124] ss:$8 sps:$4 sm:$0xff]   ;;  %v3722_v19 = vld [vmem:[#allocation6 + $0x1b4] ss:$8 sps:$4 sm:$0xff]  }
 0x1b5   : > { %v939_v10 = vadd.f32 %v4552_v24, %v903_v8  ;;  %1298 = vmatmul.mubr.bf16.gmra.mrb[36].mxu1 %v4642_v56  ;;  %v961_v50 = vmax.f32 %v937_v26, 0.0  ;;  %v3632_v26 = vld [vmem:[#allocation3 + $0xd4] ss:$8 sps:$4 sm:$0xff]   ;;  %v3630_v8 = vld [vmem:[#allocation3 + $0xd0] ss:$8 sps:$4 sm:$0xff]  }
 0x1b6   : > { %v940_v11 = vadd.f32 %v4555_v54, %v904_v47  ;;  %1501 = vmatpush1.bf16.msra.mxu1 %v3609_v25  ;;  %v962_v60 = vmax.f32 %v938_v59, 0.0  ;;  %v3627_v25 = vld [vmem:[#allocation3 + $0xc0] ss:$8 sps:$4 sm:$0xff]   ;;  %v3635_v43 = vld [vmem:[#allocation3 + $0xe4] ss:$8 sps:$4 sm:$0xff]  }
 0x1b7   : > { %v963_v28 = vmax.f32 %v939_v10, 0.0  ;;  %1502 = vmatprep.subr.bf16.mxu1 %v3614_v44  ;;  %v3633_v44 = vld [vmem:[#allocation3 + $0xe0] ss:$8 sps:$4 sm:$0xff]   ;;  %v3638_v59 = vld [vmem:[#allocation3 + $0xf4] ss:$8 sps:$4 sm:$0xff]  }
 0x1b8   : > { %v964_v14 = vmax.f32 %v940_v11, 0.0  ;;  %v852_v61 = vpop.f32.mrb[44].mxu0  ;;  %v3636_v46 = vld [vmem:[#allocation3 + $0xf0] ss:$8 sps:$4 sm:$0xff]   ;;  %v3641_v47 = vld [vmem:[#allocation3 + $0x204] ss:$8 sps:$4 sm:$0xff]  }
 0x1b9   : > { %v905_v53 = vmax.f32 %v4883_v52, %v852_v61  ;;  %v854_v62 = vpop.f32.mrb[45].mxu0  ;;  %v4664_v15 = vpack.c.bf16 %v963_v28, %v961_v50  ;;  %v3639_v10 = vld [vmem:[#allocation3 + $0x200] ss:$8 sps:$4 sm:$0xff]   ;;  %v3644_v11 = vld [vmem:[#allocation3 + $0x214] ss:$8 sps:$4 sm:$0xff]  }
 0x1ba   : > { %v906_v17 = vmax.f32 %v4884_v16, %v854_v62  ;;  %1503 = vmatpush1.bf16.msra.mxu1 %v3612_v49  ;;  %v856_v18 = vpop.f32.mrb[46].mxu0  ;;  %v4669_v31 = vpack.c.bf16 %v964_v14, %v962_v60  ;;  %v3642_v49 = vld [vmem:[#allocation3 + $0x210] ss:$8 sps:$4 sm:$0xff]   ;;  %v3647_v50 = vld [vmem:[#allocation3 + $0x224] ss:$8 sps:$4 sm:$0xff]  }
 0x1bb   : > { %v941_v2 = vadd.f32 %v4552_v24, %v905_v53  ;;  %v907_v35 = vmax.f32 %v4885_v34, %v856_v18  ;;  %v858_v0 = vpop.f32.mrb[47].mxu0  ;;  %1504 = vmatprep.subr.bf16.mxu1 %v3617_v29  ;;  %v3645_v28 = vld [vmem:[#allocation3 + $0x220] ss:$8 sps:$4 sm:$0xff]   ;;  %v3650_v29 = vld [vmem:[#allocation3 + $0x234] ss:$8 sps:$4 sm:$0xff]  }
 0x1bc   : > { %v942_v3 = vadd.f32 %v4555_v54, %v906_v17  ;;  %v908_v45 = vmax.f32 %v4886_v42, %v858_v0  ;;  %1307 = vmatprep.mubr.bf16.mxu1 %v4669_v31  ;;  %v3648_v60 = vld [vmem:[#allocation3 + $0x230] ss:$8 sps:$4 sm:$0xff]   ;;  %v3653_v14 = vld [vmem:[#allocation3 + $0x244] ss:$8 sps:$4 sm:$0xff]   ;;  %v3651_v61 = vld [vmem:[#allocation3 + $0x240] ss:$8 sps:$4 sm:$0xff]  }
 0x1bd   : > { %v943_v4 = vadd.f32 %v4552_v24, %v907_v35  ;;  %1308 = vmatmul.mubr.bf16.gmra.mrb[40].mxu1 %v4664_v15  ;;  %v965_v39 = vmax.f32 %v941_v2, 0.0  ;;  %v3626_v24 = vld [vmem:[#allocation3 + $0xb4] ss:$8 sps:$4 sm:$0xff]   ;;  %v3654_v52 = vld [vmem:[#allocation3 + $0x250] ss:$8 sps:$4 sm:$0xff]  }
 0x1be   : > { %v944_v37 = vadd.f32 %v4555_v54, %v908_v45  ;;  %1505 = vmatpush1.bf16.msra.mxu1 %v3615_v32  ;;  %v966_v12 = vmax.f32 %v942_v3, 0.0  ;;  %v3687_v54 = vld [vmem:[#allocation6 + $0x100] ss:$8 sps:$4 sm:$0xff]   ;;  %v3659_v53 = vld [vmem:[#allocation3 + $0x264] ss:$8 sps:$4 sm:$0xff]  }
 0x1bf   : > { %v967_v38 = vmax.f32 %v943_v4, 0.0  ;;  %1506 = vmatprep.subr.bf16.mxu1 %v3620_v57  ;;  %2207 = vmatpush1.bf16.msra.mxu0 %v3687_v54  ;;  %v3662_v62 = vld [vmem:[#allocation3 + $0x274] ss:$8 sps:$4 sm:$0xff]   ;;  %v3660_v16 = vld [vmem:[#allocation3 + $0x270] ss:$8 sps:$4 sm:$0xff]  }
 0x1c0   : > { %v968_v27 = vmax.f32 %v944_v37, 0.0  ;;  %2208 = vmatprep.subr.bf16.mxu0 %v3692_v20  ;;  %v3665_v17 = vld [vmem:[#allocation3 + $0x284] ss:$8 sps:$4 sm:$0xff]   ;;  %v3663_v18 = vld [vmem:[#allocation3 + $0x280] ss:$8 sps:$4 sm:$0xff]  }
 0x1c1   : > { %v4683_v48 = vpack.c.bf16 %v967_v38, %v965_v39  ;;  %v3668_v32 = vld [vmem:[#allocation3 + $0x294] ss:$8 sps:$4 sm:$0xff]   ;;  %v3666_v2 = vld [vmem:[#allocation3 + $0x290] ss:$8 sps:$4 sm:$0xff]   ;;  %v3671_v34 = vld [vmem:[#allocation3 + $0x2a4] ss:$8 sps:$4 sm:$0xff]  }
 0x1c2   : > { %1507 = vmatpush1.bf16.msra.mxu1 %v3618_v36  ;;  %v4685_v33 = vpack.c.bf16 %v968_v27, %v966_v12  ;;  %v3669_v35 = vld [vmem:[#allocation3 + $0x2a0] ss:$8 sps:$4 sm:$0xff]   ;;  %v3674_v0 = vld [vmem:[#allocation3 + $0x2b4] ss:$8 sps:$4 sm:$0xff]   ;;  %v3672_v57 = vld [vmem:[#allocation3 + $0x2b0] ss:$8 sps:$4 sm:$0xff]  }
 0x1c3   : > { %1508 = vmatprep.subr.bf16.mxu1 %v3623_v6  ;;  %2209 = vmatpush1.bf16.msra.mxu0 %v3690_v23  ;;  %v3677_v3 = vld [vmem:[#allocation3 + $0x2c4] ss:$8 sps:$4 sm:$0xff]   ;;  %v3675_v42 = vld [vmem:[#allocation3 + $0x2c0] ss:$8 sps:$4 sm:$0xff]   ;;  %v3680_v45 = vld [vmem:[#allocation3 + $0x2d4] ss:$8 sps:$4 sm:$0xff]  }
 0x1c4   : > { %1317 = vmatprep.mubr.bf16.mxu1 %v4685_v33  ;;  %2210 = vmatprep.subr.bf16.mxu0 %v3695_v51  ;;  %v3678_v4 = vld [vmem:[#allocation3 + $0x2d0] ss:$8 sps:$4 sm:$0xff]   ;;  %v3683_v37 = vld [vmem:[#allocation3 + $0x2e4] ss:$8 sps:$4 sm:$0xff]   ;;  %v3681_v36 = vld [vmem:[#allocation3 + $0x2e0] ss:$8 sps:$4 sm:$0xff]  }
 0x1c5   : > { %1318 = vmatmul.mubr.bf16.gmra.mrb[44].mxu1 %v4683_v48  ;;  %v3686_v39 = vld [vmem:[#allocation3 + $0x2f4] ss:$8 sps:$4 sm:$0xff]   ;;  %v3684_v38 = vld [vmem:[#allocation3 + $0x2f0] ss:$8 sps:$4 sm:$0xff]   ;;  %v3713_v27 = vld [vmem:[#allocation6 + $0x184] ss:$8 sps:$4 sm:$0xff]  }
 0x1c6   : > { %1509 = vmatpush1.bf16.msra.mxu1 %v3621_v55  ;;  %1520 = vmatprep.mubr.bf16.mxu1 %v4887_v41  ;;  %v3710_v6 = vld [vmem:[#allocation6 + $0x174] ss:$8 sps:$4 sm:$0xff]   ;;  %v3708_v12 = vld [vmem:[#allocation6 + $0x170] ss:$8 sps:$4 sm:$0xff]   ;;  %v3717_v54 = vld [vmem:[#allocation6 + $0x1a0] ss:$8 sps:$4 sm:$0xff]  }
 0x1c7   : > { %1510 = vmatprep.subr.bf16.mxu1 %v3626_v24  ;;  %2211 = vmatpush1.bf16.msra.mxu0 %v3693_v7  ;;  %v3714_v55 = vld [vmem:[#allocation6 + $0x190] ss:$8 sps:$4 sm:$0xff]   ;;  %v3719_v24 = vld [vmem:[#allocation6 + $0x1a4] ss:$8 sps:$4 sm:$0xff]   ;;  %v3723_v20 = vld [vmem:[#allocation6 + $0x1c0] ss:$8 sps:$4 sm:$0xff]  }
 0x1c8   : > { %v3726_v23 = vld [vmem:[#allocation6 + $0x1d0] ss:$8 sps:$4 sm:$0xff]   ;;  %v3731_v51 = vld [vmem:[#allocation6 + $0x1e4] ss:$8 sps:$4 sm:$0xff]  }
 0x1c9   : > { %v3732_v7 = vld [vmem:[#allocation6 + $0x1f0] ss:$8 sps:$4 sm:$0xff]  }
 0x1ca   : > { %1511 = vmatpush1.bf16.msra.mxu1 %v3624_v40  ;;  %v3720_v40 = vld [vmem:[#allocation6 + $0x1b0] ss:$8 sps:$4 sm:$0xff]  }
 0x1cb   : > { %1512 = vmatprep.subr.bf16.mxu1 %v3629_v22  ;;  %v3728_v22 = vld [vmem:[#allocation6 + $0x1d4] ss:$8 sps:$4 sm:$0xff]  }
 0x1ce   : > { %1513 = vmatpush1.bf16.msra.mxu1 %v3627_v25  ;;  %v3729_v25 = vld [vmem:[#allocation6 + $0x1e0] ss:$8 sps:$4 sm:$0xff]  }
 0x1cf   : > { %1514 = vmatprep.subr.bf16.mxu1 %v3632_v26  ;;  %v3734_v26 = vld [vmem:[#allocation6 + $0x1f4] ss:$8 sps:$4 sm:$0xff]  }
 0x1d2   : > { %1515 = vmatpush1.bf16.msra.mxu1 %v3630_v8  ;;  %v3737_v8 = vld [vmem:[#allocation6 + $0x4] ss:$8 sps:$4 sm:$0xff]  }
 0x1d3   : > { %1516 = vmatprep.subr.bf16.mxu1 %v3635_v43  ;;  %v1902_v43 = vld [vmem:[%s4824_s4] sm:$0x3] }
 0x1d6   : > { %1517 = vmatpush1.bf16.msra.mxu1 %v3633_v44  ;;  %v4717_v44 = vrot.slane %v1902_v43, %v4542_v30 }
 0x1d7   : > { %1518 = vmatprep.subr.bf16.mxu1 %v3638_v59 }
 0x1da   : > { %1519 = vmatpush1.bf16.msra.mxu1 %v3636_v46 }
 0x1db   : > { %1785 = vmatprep.subr.bf16.mxu1 %v3641_v47 }
 0x1dd   : > { %1521 = vmatmul.mubr.bf16.vlgmr.msra.gmra.mrb[24].mxu1 %v4887_v41 }
 0x1de   : > { %1530 = vmatprep.mubr.bf16.mxu1 %v4581_v9  ;;  %1786 = vmatpush1.bf16.msra.mxu1 %v3639_v10  ;;  %v3656_v9 = vld [vmem:[#allocation3 + $0x254] ss:$8 sps:$4 sm:$0xff]  }
 0x1df   : > { %1787 = vmatprep.subr.bf16.mxu1 %v3644_v11 }
 0x1e2   : > { %1788 = vmatpush1.bf16.msra.mxu1 %v3642_v49 }
 0x1e3   : > { %1789 = vmatprep.subr.bf16.mxu1 %v3647_v50  ;;  %v4888_v50 = vld [vmem:[#allocation22_spill] sm:$0xff] }
 0x1e5   : > { %1531 = vmatmul.mubr.bf16.gmra.mrb[28].mxu1 %v4573_v21  ;;  %v3657_v21 = vld [vmem:[#allocation3 + $0x260] ss:$8 sps:$4 sm:$0xff]  }
 0x1e6   : > { %1540 = vmatprep.mubr.bf16.mxu1 %v4603_v5  ;;  %1790 = vmatpush1.bf16.msra.mxu1 %v3645_v28  ;;  %v4722_v28 = vrot.slane %v1902_v43, %v4888_v50 }
 0x1e7   : > { %1791 = vmatprep.subr.bf16.mxu1 %v3650_v29 }
 0x1ea   : > { %1792 = vmatpush1.bf16.msra.mxu1 %v3648_v60 }
 0x1eb   : > { %1793 = vmatprep.subr.bf16.mxu1 %v3653_v14 }
 0x1ed   : > { %1541 = vmatmul.mubr.bf16.gmra.mrb[32].mxu1 %v4598_v1 }
 0x1ee   : > { %1550 = vmatprep.mubr.bf16.mxu1 %v4625_v63  ;;  %1794 = vmatpush1.bf16.msra.mxu1 %v3651_v61 }
 0x1ef   : > { %1795 = vmatprep.subr.bf16.mxu1 %v3656_v9 }
 0x1f2   : > { %1796 = vmatpush1.bf16.msra.mxu1 %v3654_v52 }
 0x1f3   : > { %1797 = vmatprep.subr.bf16.mxu1 %v3659_v53 }
 0x1f5   : > { %1551 = vmatmul.mubr.bf16.gmra.mrb[36].mxu1 %v4620_v13 }
 0x1f6   : > { %1560 = vmatprep.mubr.bf16.mxu1 %v4647_v58  ;;  %1798 = vmatpush1.bf16.msra.mxu1 %v3657_v21 }
 0x1f7   : > { %1799 = vmatprep.subr.bf16.mxu1 %v3662_v62 }
 0x1fa   : > { %1800 = vmatpush1.bf16.msra.mxu1 %v3660_v16 }
 0x1fb   : > { %1801 = vmatprep.subr.bf16.mxu1 %v3665_v17 }
 0x1fd   : > { %1561 = vmatmul.mubr.bf16.gmra.mrb[40].mxu1 %v4642_v56 }
 0x1fe   : > { %1570 = vmatprep.mubr.bf16.mxu1 %v4669_v31  ;;  %1802 = vmatpush1.bf16.msra.mxu1 %v3663_v18 }
 0x1ff   : > { %1803 = vmatprep.subr.bf16.mxu1 %v3668_v32 }
 0x202   : > { %1804 = vmatpush1.bf16.msra.mxu1 %v3666_v2 }
 0x203   : > { %1805 = vmatprep.subr.bf16.mxu1 %v3671_v34 }
 0x205   : > { %1571 = vmatmul.mubr.bf16.gmra.mrb[44].mxu1 %v4664_v15 }
 0x206   : > { %1806 = vmatpush1.bf16.msra.mxu1 %v3669_v35  ;;  %1817 = vmatprep.mubr.bf16.mxu1 %v4603_v5  ;;  %v3696_v5 = vld [vmem:[#allocation6 + $0x130] ss:$8 sps:$4 sm:$0xff]  }
 0x207   : > { %1807 = vmatprep.subr.bf16.mxu1 %v3674_v0 }
 0x20a   : > { %1808 = vmatpush1.bf16.msra.mxu1 %v3672_v57 }
 0x20b   : > { %1809 = vmatprep.subr.bf16.mxu1 %v3677_v3 }
 0x20e   : > { %1810 = vmatpush1.bf16.msra.mxu1 %v3675_v42 }
 0x20f   : > { %1811 = vmatprep.subr.bf16.mxu1 %v3680_v45 }
 0x212   : > { %1812 = vmatpush1.bf16.msra.mxu1 %v3678_v4 }
 0x213   : > { %1813 = vmatprep.subr.bf16.mxu1 %v3683_v37 }
 0x216   : > { %1814 = vmatpush1.bf16.msra.mxu1 %v3681_v36 }
 0x217   : > { %1815 = vmatprep.subr.bf16.mxu1 %v3686_v39 }
 0x21a   : > { %1816 = vmatpush1.bf16.msra.mxu1 %v3684_v38 }
 0x21d   : > { %1818 = vmatmul.mubr.bf16.vlgmr.msra.gmra.mrb[24].mxu1 %v4598_v1  ;;  %v3698_v1 = vld [vmem:[#allocation6 + $0x134] ss:$8 sps:$4 sm:$0xff]  }
 0x21e   : > { %1827 = vmatprep.mubr.bf16.mxu1 %v4625_v63  ;;  %2212 = vmatprep.subr.bf16.mxu0 %v3698_v1  ;;  %v3699_v63 = vld [vmem:[#allocation6 + $0x140] ss:$8 sps:$4 sm:$0xff]  }
 0x21f   : > { %2213 = vmatpush1.bf16.msra.mxu0 %v3696_v5 }
 0x225   : > { %1828 = vmatmul.mubr.bf16.gmra.mrb[28].mxu1 %v4620_v13  ;;  %v3701_v13 = vld [vmem:[#allocation6 + $0x144] ss:$8 sps:$4 sm:$0xff]  }
 0x226   : > { %1837 = vmatprep.mubr.bf16.mxu1 %v4647_v58  ;;  %2214 = vmatprep.subr.bf16.mxu0 %v3701_v13  ;;  %v3702_v58 = vld [vmem:[#allocation6 + $0x150] ss:$8 sps:$4 sm:$0xff]  }
 0x227   : > { %2215 = vmatpush1.bf16.msra.mxu0 %v3699_v63 }
 0x22d   : > { %1838 = vmatmul.mubr.bf16.gmra.mrb[32].mxu1 %v4642_v56  ;;  %v3704_v56 = vld [vmem:[#allocation6 + $0x154] ss:$8 sps:$4 sm:$0xff]  }
 0x22e   : > { %1847 = vmatprep.mubr.bf16.mxu1 %v4669_v31  ;;  %2216 = vmatprep.subr.bf16.mxu0 %v3704_v56  ;;  %v3705_v31 = vld [vmem:[#allocation6 + $0x160] ss:$8 sps:$4 sm:$0xff]  }
 0x22f   : > { %2217 = vmatpush1.bf16.msra.mxu0 %v3702_v58 }
 0x235   : > { %1848 = vmatmul.mubr.bf16.gmra.mrb[36].mxu1 %v4664_v15  ;;  %v3707_v15 = vld [vmem:[#allocation6 + $0x164] ss:$8 sps:$4 sm:$0xff]  }
 0x236   : > { %1857 = vmatprep.mubr.bf16.mxu1 %v4685_v33  ;;  %2218 = vmatprep.subr.bf16.mxu0 %v3707_v15  ;;  %v3716_v33 = vld [vmem:[#allocation6 + $0x194] ss:$8 sps:$4 sm:$0xff]  }
 0x237   : > { %2219 = vmatpush1.bf16.msra.mxu0 %v3705_v31 }
 0x238   : > { %2220 = vmatprep.subr.bf16.mxu0 %v3710_v6 }
 0x23b   : > { %2221 = vmatpush1.bf16.msra.mxu0 %v3708_v12 }
 0x23c   : > { %2222 = vmatprep.subr.bf16.mxu0 %v3713_v27 }
 0x23d   : > { %1858 = vmatmul.mubr.bf16.gmra.mrb[40].mxu1 %v4683_v48  ;;  %v3711_v48 = vld [vmem:[#allocation6 + $0x180] ss:$8 sps:$4 sm:$0xff]  }
 0x23e   : > { %1867 = vmatprep.mubr.bf16.mxu1 %v4887_v41 }
 0x23f   : > { %2223 = vmatpush1.bf16.msra.mxu0 %v3711_v48 }
 0x240   : > { %2224 = vmatprep.subr.bf16.mxu0 %v3716_v33 }
 0x243   : > { %2225 = vmatpush1.bf16.msra.mxu0 %v3714_v55 }
 0x244   : > { %2226 = vmatprep.subr.bf16.mxu0 %v3719_v24 }
 0x245   : > { %1868 = vmatmul.mubr.bf16.gmra.mrb[44].mxu1 %v4887_v41  ;;  %v3725_v41 = vld [vmem:[#allocation6 + $0x1c4] ss:$8 sps:$4 sm:$0xff]  }
 0x247   : > { %2227 = vmatpush1.bf16.msra.mxu0 %v3717_v54 }
 0x248   : > { %2228 = vmatprep.subr.bf16.mxu0 %v3722_v19 }
 0x24b   : > { %2229 = vmatpush1.bf16.msra.mxu0 %v3720_v40 }
 0x24c   : > { %2230 = vmatprep.subr.bf16.mxu0 %v3725_v41 }
 0x24f   : > { %2231 = vmatpush1.bf16.msra.mxu0 %v3723_v20 }
 0x250   : > { %2232 = vmatprep.subr.bf16.mxu0 %v3728_v22 }
 0x253   : > { %2233 = vmatpush1.bf16.msra.mxu0 %v3726_v23 }
 0x254   : > { %2234 = vmatprep.subr.bf16.mxu0 %v3731_v51 }
 0x257   : > { %2235 = vmatpush1.bf16.msra.mxu0 %v3729_v25 }
 0x258   : > { %2236 = vmatprep.subr.bf16.mxu0 %v3734_v26 }
 0x25b   : > { %2237 = vmatpush1.bf16.msra.mxu0 %v3732_v7 }
 0x25c   : > { %2409 = vmatprep.subr.bf16.mxu0 %v3737_v8 }
 0x2f0   : > { %v1819_v59 = vpop.f32.mrb[24].mxu1 }
 0x2f1   : > { %v1914_v46 = vadd.f32 %v4717_v44, %v1819_v59  ;;  %v1821_v47 = vpop.f32.mrb[25].mxu1 }
 0x2f2   : > { %v1823_v10 = vpop.f32.mrb[26].mxu1  ;;  %v1915_v29 = vadd.f32 %v4722_v28, %v1821_v47 }
 0x2f3   : > { %v1916_v11 = vadd.f32 %v4717_v44, %v1823_v10  ;;  %v1825_v49 = vpop.f32.mrb[27].mxu1  ;;  %v1938_v21 = vmax.f32 %v1914_v46, 0.0 }
 0x2f4   : > { %v1917_v9 = vadd.f32 %v4722_v28, %v1825_v49  ;;  %v1939_v18 = vmax.f32 %v1915_v29, 0.0 }
 0x2f5   : > { %v1940_v34 = vmax.f32 %v1916_v11, 0.0 }
 0x2f6   : > { %v1941_v57 = vmax.f32 %v1917_v9, 0.0 }
 0x2f8   : > { %v1829_v60 = vpop.f32.mrb[28].mxu1 }
 0x2f9   : > { %v1918_v14 = vadd.f32 %v4717_v44, %v1829_v60  ;;  %v1831_v61 = vpop.f32.mrb[29].mxu1 }
 0x2fa   : > { %v1919_v52 = vadd.f32 %v4722_v28, %v1831_v61  ;;  %v1833_v53 = vpop.f32.mrb[30].mxu1 }
 0x2fb   : > { %v1942_v62 = vmax.f32 %v1918_v14, 0.0  ;;  %v1920_v16 = vadd.f32 %v4717_v44, %v1833_v53  ;;  %v1835_v17 = vpop.f32.mrb[31].mxu1 }
 0x2fc   : > { %v1943_v32 = vmax.f32 %v1919_v52, 0.0  ;;  %v1921_v2 = vadd.f32 %v4722_v28, %v1835_v17 }
 0x2fd   : > { %v1962_v35 = vmax.f32 %v1938_v21, %v1942_v62  ;;  %v1944_v0 = vmax.f32 %v1920_v16, 0.0 }
 0x2fe   : > { %v1963_v3 = vmax.f32 %v1939_v18, %v1943_v32  ;;  %v1945_v42 = vmax.f32 %v1921_v2, 0.0 }
 0x2ff   : > { %v1964_v45 = vmax.f32 %v1940_v34, %v1944_v0 }
 0x300   : > { %v1965_v4 = vmax.f32 %v1941_v57, %v1945_v42  ;;  %v1839_v37 = vpop.f32.mrb[32].mxu1 }
 0x301   : > { %v1922_v36 = vadd.f32 %v4717_v44, %v1839_v37  ;;  %v1841_v39 = vpop.f32.mrb[33].mxu1 }
 0x302   : > { %v1923_v38 = vadd.f32 %v4722_v28, %v1841_v39  ;;  %v1843_v1 = vpop.f32.mrb[34].mxu1 }
 0x303   : > { %v1946_v5 = vmax.f32 %v1922_v36, 0.0  ;;  %v1924_v13 = vadd.f32 %v4717_v44, %v1843_v1  ;;  %v1845_v63 = vpop.f32.mrb[35].mxu1  ;;  %v3735_v1 = vld [vmem:[#allocation6] ss:$8 sps:$4 sm:$0xff]  }
 0x304   : > { %v1947_v56 = vmax.f32 %v1923_v38, 0.0  ;;  %v1925_v58 = vadd.f32 %v4722_v28, %v1845_v63  ;;  %v3741_v63 = vld [vmem:[#allocation6 + $0x20] ss:$8 sps:$4 sm:$0xff]  }
 0x305   : > { %v4734_v15 = vmax.f32 %v1962_v35, %v1946_v5  ;;  %v1948_v31 = vmax.f32 %v1924_v13, 0.0  ;;  %v3740_v5 = vld [vmem:[#allocation6 + $0x14] ss:$8 sps:$4 sm:$0xff]   ;;  %v3738_v13 = vld [vmem:[#allocation6 + $0x10] ss:$8 sps:$4 sm:$0xff]  }
 0x306   : > { %v1967_v6 = vmax.f32 %v1963_v3, %v1947_v56  ;;  %v1949_v12 = vmax.f32 %v1925_v58, 0.0  ;;  %v3744_v56 = vld [vmem:[#allocation6 + $0x30] ss:$8 sps:$4 sm:$0xff]   ;;  %v3749_v58 = vld [vmem:[#allocation6 + $0x44] ss:$8 sps:$4 sm:$0xff]  }
 0x307   : > { %v4736_v27 = vmax.f32 %v1964_v45, %v1948_v31  ;;  %v3747_v31 = vld [vmem:[#allocation6 + $0x40] ss:$8 sps:$4 sm:$0xff]  }
 0x308   : > { %v1969_v48 = vmax.f32 %v1965_v4, %v1949_v12  ;;  %v1849_v33 = vpop.f32.mrb[36].mxu1  ;;  %v3750_v12 = vld [vmem:[#allocation6 + $0x50] ss:$8 sps:$4 sm:$0xff]  }
 0x309   : > { %v1978_v55 = vpack.c.bf16 %v4736_v27, %v4734_v15  ;;  %v1851_v24 = vpop.f32.mrb[37].mxu1  ;;  %v1926_v41 = vadd.f32 %v4717_v44, %v1849_v33  ;;  %v3753_v33 = vld [vmem:[#allocation6 + $0x60] ss:$8 sps:$4 sm:$0xff]   ;;  %v3803_v15 = vld [vmem:[#allocation8 + $0x64] ss:$8 sps:$4 sm:$0xff]  }
 0x30a   : > { %v1853_v54 = vpop.f32.mrb[38].mxu1  ;;  %v1979_v19 = vpack.c.bf16 %v1969_v48, %v1967_v6  ;;  %v1927_v20 = vadd.f32 %v4722_v28, %v1851_v24  ;;  %v3752_v6 = vld [vmem:[#allocation6 + $0x54] ss:$8 sps:$4 sm:$0xff]   ;;  %v3755_v48 = vld [vmem:[#allocation6 + $0x64] ss:$8 sps:$4 sm:$0xff]  }
 0x30b   : > { %v1855_v40 = vpop.f32.mrb[39].mxu1  ;;  %v1928_v23 = vadd.f32 %v4717_v44, %v1853_v54  ;;  %v1950_v43 = vmax.f32 %v1926_v41, 0.0  ;;  %v3758_v24 = vld [vmem:[#allocation6 + $0x74] ss:$8 sps:$4 sm:$0xff]   ;;  %v3756_v54 = vld [vmem:[#allocation6 + $0x70] ss:$8 sps:$4 sm:$0xff]  }
 0x30c   : > { %v1929_v26 = vadd.f32 %v4722_v28, %v1855_v40  ;;  %v1951_v10 = vmax.f32 %v1927_v20, 0.0  ;;  %v3759_v40 = vld [vmem:[#allocation6 + $0x80] ss:$8 sps:$4 sm:$0xff]   ;;  %v3764_v41 = vld [vmem:[#allocation6 + $0x94] ss:$8 sps:$4 sm:$0xff]  }
 0x30d   : > { %v1952_v29 = vmax.f32 %v1928_v23, 0.0  ;;  %v3762_v20 = vld [vmem:[#allocation6 + $0x90] ss:$8 sps:$4 sm:$0xff]   ;;  %v3765_v23 = vld [vmem:[#allocation6 + $0xa0] ss:$8 sps:$4 sm:$0xff]  }
 0x30e   : > { %v1953_v61 = vmax.f32 %v1929_v26, 0.0  ;;  %v3773_v26 = vld [vmem:[#allocation6 + $0xc4] ss:$8 sps:$4 sm:$0xff]   ;;  %v3801_v27 = vld [vmem:[#allocation8 + $0x60] ss:$8 sps:$4 sm:$0xff]  }
 0x310   : > { %v1859_v22 = vpop.f32.mrb[40].mxu1 }
 0x311   : > { %v1930_v51 = vadd.f32 %v4717_v44, %v1859_v22  ;;  %v1861_v25 = vpop.f32.mrb[41].mxu1  ;;  %v3767_v22 = vld [vmem:[#allocation6 + $0xa4] ss:$8 sps:$4 sm:$0xff]  }
 0x312   : > { %v1931_v7 = vadd.f32 %v4722_v28, %v1861_v25  ;;  %v1863_v8 = vpop.f32.mrb[42].mxu1  ;;  %v3768_v25 = vld [vmem:[#allocation6 + $0xb0] ss:$8 sps:$4 sm:$0xff]  }
 0x313   : > { %v1954_v59 = vmax.f32 %v1930_v51, 0.0  ;;  %v1932_v46 = vadd.f32 %v4717_v44, %v1863_v8  ;;  %v1865_v47 = vpop.f32.mrb[43].mxu1  ;;  %v3770_v51 = vld [vmem:[#allocation6 + $0xb4] ss:$8 sps:$4 sm:$0xff]  }
 0x314   : > { %v1955_v11 = vmax.f32 %v1931_v7, 0.0  ;;  %v1933_v49 = vadd.f32 %v4722_v28, %v1865_v47  ;;  %v3771_v7 = vld [vmem:[#allocation6 + $0xc0] ss:$8 sps:$4 sm:$0xff]   ;;  %v3776_v8 = vld [vmem:[#allocation6 + $0xd4] ss:$8 sps:$4 sm:$0xff]  }
 0x315   : > { %v1970_v60 = vmax.f32 %v1950_v43, %v1954_v59  ;;  %v1956_v14 = vmax.f32 %v1932_v46, 0.0  ;;  %v3774_v43 = vld [vmem:[#allocation6 + $0xd0] ss:$8 sps:$4 sm:$0xff]   ;;  %v3779_v59 = vld [vmem:[#allocation6 + $0xe4] ss:$8 sps:$4 sm:$0xff]  }
 0x316   : > { %v1971_v9 = vmax.f32 %v1951_v10, %v1955_v11  ;;  %v1957_v52 = vmax.f32 %v1933_v49, 0.0  ;;  %v3777_v46 = vld [vmem:[#allocation6 + $0xe0] ss:$8 sps:$4 sm:$0xff]   ;;  %v3782_v47 = vld [vmem:[#allocation6 + $0xf4] ss:$8 sps:$4 sm:$0xff]  }
 0x317   : > { %v1972_v53 = vmax.f32 %v1952_v29, %v1956_v14  ;;  %v3780_v10 = vld [vmem:[#allocation6 + $0xf0] ss:$8 sps:$4 sm:$0xff]   ;;  %v3785_v11 = vld [vmem:[#allocation8 + $0x4] ss:$8 sps:$4 sm:$0xff]   ;;  %v3783_v49 = vld [vmem:[#allocation8] ss:$8 sps:$4 sm:$0xff]  }
 0x318   : > { %v1973_v21 = vmax.f32 %v1953_v61, %v1957_v52  ;;  %v1869_v62 = vpop.f32.mrb[44].mxu1  ;;  %v3788_v29 = vld [vmem:[#allocation8 + $0x14] ss:$8 sps:$4 sm:$0xff]   ;;  %v3791_v14 = vld [vmem:[#allocation8 + $0x24] ss:$8 sps:$4 sm:$0xff]  }
 0x319   : > { %v1934_v16 = vadd.f32 %v4717_v44, %v1869_v62  ;;  %v1871_v17 = vpop.f32.mrb[45].mxu1  ;;  %v3789_v61 = vld [vmem:[#allocation8 + $0x20] ss:$8 sps:$4 sm:$0xff]   ;;  %v3792_v52 = vld [vmem:[#allocation8 + $0x30] ss:$8 sps:$4 sm:$0xff]  }
 0x31a   : > { %v1935_v18 = vadd.f32 %v4722_v28, %v1871_v17  ;;  %v1873_v32 = vpop.f32.mrb[46].mxu1  ;;  %v3800_v62 = vld [vmem:[#allocation8 + $0x54] ss:$8 sps:$4 sm:$0xff]   ;;  %v3804_v17 = vld [vmem:[#allocation8 + $0x70] ss:$8 sps:$4 sm:$0xff]  }
 0x31b   : > { %v1958_v2 = vmax.f32 %v1934_v16, 0.0  ;;  %v1936_v34 = vadd.f32 %v4717_v44, %v1873_v32  ;;  %v1875_v35 = vpop.f32.mrb[47].mxu1  ;;  %v3743_v44 = vld [vmem:[#allocation6 + $0x24] ss:$8 sps:$4 sm:$0xff]   ;;  %v3798_v16 = vld [vmem:[#allocation8 + $0x50] ss:$8 sps:$4 sm:$0xff]  }
 0x31c   : > { %v1959_v0 = vmax.f32 %v1935_v18, 0.0  ;;  %v1937_v57 = vadd.f32 %v4722_v28, %v1875_v35  ;;  %v3746_v28 = vld [vmem:[#allocation6 + $0x34] ss:$8 sps:$4 sm:$0xff]   ;;  %v3809_v18 = vld [vmem:[#allocation8 + $0x84] ss:$8 sps:$4 sm:$0xff]  }
 0x31d   : > { %v1974_v3 = vmax.f32 %v1970_v60, %v1958_v2  ;;  %v1960_v42 = vmax.f32 %v1936_v34, 0.0  ;;  %v3786_v60 = vld [vmem:[#allocation8 + $0x10] ss:$8 sps:$4 sm:$0xff]   ;;  %v3807_v32 = vld [vmem:[#allocation8 + $0x80] ss:$8 sps:$4 sm:$0xff]  }
 0x31e   : > { %v1975_v45 = vmax.f32 %v1971_v9, %v1959_v0  ;;  %v1961_v4 = vmax.f32 %v1937_v57, 0.0  ;;  %v3794_v9 = vld [vmem:[#allocation8 + $0x34] ss:$8 sps:$4 sm:$0xff]   ;;  %v3810_v34 = vld [vmem:[#allocation8 + $0x90] ss:$8 sps:$4 sm:$0xff]  }
 0x31f   : > { %v1976_v37 = vmax.f32 %v1972_v53, %v1960_v42  ;;  %v3797_v53 = vld [vmem:[#allocation8 + $0x44] ss:$8 sps:$4 sm:$0xff]   ;;  %v3812_v2 = vld [vmem:[#allocation8 + $0x94] ss:$8 sps:$4 sm:$0xff]   ;;  %v3813_v0 = vld [vmem:[#allocation8 + $0xa0] ss:$8 sps:$4 sm:$0xff]  }
 0x320   : > { %v1977_v36 = vmax.f32 %v1973_v21, %v1961_v4  ;;  %v3795_v21 = vld [vmem:[#allocation8 + $0x40] ss:$8 sps:$4 sm:$0xff]   ;;  %v3815_v35 = vld [vmem:[#allocation8 + $0xa4] ss:$8 sps:$4 sm:$0xff]   ;;  %v3818_v57 = vld [vmem:[#allocation8 + $0xb4] ss:$8 sps:$4 sm:$0xff]  }
 0x321   : > { %v2012_v39 = vpack.c.bf16 %v1976_v37, %v1974_v3  ;;  %v3816_v3 = vld [vmem:[#allocation8 + $0xb0] ss:$8 sps:$4 sm:$0xff]   ;;  %v3821_v42 = vld [vmem:[#allocation8 + $0xc4] ss:$8 sps:$4 sm:$0xff]   ;;  %v3824_v4 = vld [vmem:[#allocation8 + $0xd4] ss:$8 sps:$4 sm:$0xff]  }
 0x322   : > { %v2013_v38 = vpack.c.bf16 %v1977_v36, %v1975_v45  ;;  %v3819_v45 = vld [vmem:[#allocation8 + $0xc0] ss:$8 sps:$4 sm:$0xff]   ;;  %v3822_v37 = vld [vmem:[#allocation8 + $0xd0] ss:$8 sps:$4 sm:$0xff]   ;;  %v3827_v36 = vld [vmem:[#allocation8 + $0xe4] ss:$8 sps:$4 sm:$0xff]  }
 0x324   : > { %2238 = vmatprep.mubr.bf16.mxu0 %v2013_v38  ;;  %v3830_v38 = vld [vmem:[#allocation8 + $0xf4] ss:$8 sps:$4 sm:$0xff]  }
 0x325   : > { %2239 = vmatmul.mubr.bf16.vlgmr.msra.gmra.mrb[48].mxu0 %v2012_v39  ;;  %v3825_v39 = vld [vmem:[#allocation8 + $0xe0] ss:$8 sps:$4 sm:$0xff]  }
 0x326   : > { %2410 = vmatpush1.bf16.msra.mxu0 %v3735_v1  ;;  %2441 = vmatprep.mubr.bf16.mxu0 %v1979_v19  ;;  %v3761_v19 = vld [vmem:[#allocation6 + $0x84] ss:$8 sps:$4 sm:$0xff]   ;;  %v3828_v1 = vld [vmem:[#allocation8 + $0xf0] ss:$8 sps:$4 sm:$0xff]  }
 0x327   : > { %2411 = vmatprep.subr.bf16.mxu0 %v3740_v5  ;;  %v3831_v5 = vld [vmem:[#allocation9] ss:$8 sps:$4 sm:$0xff]  }
 0x32a   : > { %2412 = vmatpush1.bf16.msra.mxu0 %v3738_v13  ;;  %v3833_v13 = vld [vmem:[#allocation9 + $0x4] ss:$8 sps:$4 sm:$0xff]  }
 0x32b   : > { %2413 = vmatprep.subr.bf16.mxu0 %v3743_v44  ;;  %v3836_v44 = vld [vmem:[#allocation9 + $0x14] ss:$8 sps:$4 sm:$0xff]   ;;  %2931 = vmatprep.subr.bf16.mxu1 %v3833_v13 }
 0x32c   : > { %2932 = vmatpush1.bf16.msra.mxu1 %v3831_v5 }
 0x32d   : > { %2933 = vmatprep.subr.bf16.mxu1 %v3836_v44 }
 0x32e   : > { %2414 = vmatpush1.bf16.msra.mxu0 %v3741_v63  ;;  %v3834_v63 = vld [vmem:[#allocation9 + $0x10] ss:$8 sps:$4 sm:$0xff]  }
 0x32f   : > { %2415 = vmatprep.subr.bf16.mxu0 %v3746_v28  ;;  %v3839_v28 = vld [vmem:[#allocation9 + $0x24] ss:$8 sps:$4 sm:$0xff]  }
 0x330   : > { %2934 = vmatpush1.bf16.msra.mxu1 %v3834_v63 }
 0x331   : > { %2935 = vmatprep.subr.bf16.mxu1 %v3839_v28  ;;  %v2759_v28 = vld [vmem:[%s4830_s10] sm:$0x3] }
 0x332   : > { %2416 = vmatpush1.bf16.msra.mxu0 %v3744_v56  ;;  %v3837_v56 = vld [vmem:[#allocation9 + $0x20] ss:$8 sps:$4 sm:$0xff]  }
 0x333   : > { %2417 = vmatprep.subr.bf16.mxu0 %v3749_v58  ;;  %v3842_v58 = vld [vmem:[#allocation9 + $0x34] ss:$8 sps:$4 sm:$0xff]  }
 0x334   : > { %2936 = vmatpush1.bf16.msra.mxu1 %v3837_v56  ;;  %v2764_v56 = vrot.slane %v2759_v28, %v4542_v30 }
 0x335   : > { %2937 = vmatprep.subr.bf16.mxu1 %v3842_v58  ;;  %v2768_v58 = vrot.slane %v2759_v28, %v4888_v50 }
 0x336   : > { %2418 = vmatpush1.bf16.msra.mxu0 %v3747_v31  ;;  %v3840_v31 = vld [vmem:[#allocation9 + $0x30] ss:$8 sps:$4 sm:$0xff]  }
 0x337   : > { %2419 = vmatprep.subr.bf16.mxu0 %v3752_v6  ;;  %v3845_v6 = vld [vmem:[#allocation9 + $0x44] ss:$8 sps:$4 sm:$0xff]  }
 0x338   : > { %2938 = vmatpush1.bf16.msra.mxu1 %v3840_v31 }
 0x339   : > { %2939 = vmatprep.subr.bf16.mxu1 %v3845_v6 }
 0x33a   : > { %2420 = vmatpush1.bf16.msra.mxu0 %v3750_v12  ;;  %v3843_v12 = vld [vmem:[#allocation9 + $0x40] ss:$8 sps:$4 sm:$0xff]  }
 0x33b   : > { %2421 = vmatprep.subr.bf16.mxu0 %v3755_v48  ;;  %v3848_v48 = vld [vmem:[#allocation9 + $0x54] ss:$8 sps:$4 sm:$0xff]  }
 0x33c   : > { %2940 = vmatpush1.bf16.msra.mxu1 %v3843_v12 }
 0x33d   : > { %2941 = vmatprep.subr.bf16.mxu1 %v3848_v48 }
 0x33e   : > { %2422 = vmatpush1.bf16.msra.mxu0 %v3753_v33  ;;  %v3846_v33 = vld [vmem:[#allocation9 + $0x50] ss:$8 sps:$4 sm:$0xff]  }
 0x33f   : > { %2423 = vmatprep.subr.bf16.mxu0 %v3758_v24  ;;  %v3851_v24 = vld [vmem:[#allocation9 + $0x64] ss:$8 sps:$4 sm:$0xff]  }
 0x340   : > { %2942 = vmatpush1.bf16.msra.mxu1 %v3846_v33 }
 0x341   : > { %2943 = vmatprep.subr.bf16.mxu1 %v3851_v24 }
 0x342   : > { %2424 = vmatpush1.bf16.msra.mxu0 %v3756_v54  ;;  %v3849_v54 = vld [vmem:[#allocation9 + $0x60] ss:$8 sps:$4 sm:$0xff]  }
 0x343   : > { %2425 = vmatprep.subr.bf16.mxu0 %v3761_v19  ;;  %v3854_v19 = vld [vmem:[#allocation9 + $0x74] ss:$8 sps:$4 sm:$0xff]  }
 0x344   : > { %2944 = vmatpush1.bf16.msra.mxu1 %v3849_v54 }
 0x345   : > { %2945 = vmatprep.subr.bf16.mxu1 %v3854_v19 }
 0x346   : > { %2426 = vmatpush1.bf16.msra.mxu0 %v3759_v40  ;;  %v3852_v40 = vld [vmem:[#allocation9 + $0x70] ss:$8 sps:$4 sm:$0xff]  }
 0x347   : > { %2427 = vmatprep.subr.bf16.mxu0 %v3764_v41  ;;  %v3857_v41 = vld [vmem:[#allocation9 + $0x84] ss:$8 sps:$4 sm:$0xff]  }
 0x348   : > { %2946 = vmatpush1.bf16.msra.mxu1 %v3852_v40 }
 0x349   : > { %2947 = vmatprep.subr.bf16.mxu1 %v3857_v41 }
 0x34a   : > { %2428 = vmatpush1.bf16.msra.mxu0 %v3762_v20  ;;  %v3855_v20 = vld [vmem:[#allocation9 + $0x80] ss:$8 sps:$4 sm:$0xff]  }
 0x34b   : > { %2429 = vmatprep.subr.bf16.mxu0 %v3767_v22  ;;  %v3860_v22 = vld [vmem:[#allocation9 + $0x94] ss:$8 sps:$4 sm:$0xff]  }
 0x34c   : > { %2948 = vmatpush1.bf16.msra.mxu1 %v3855_v20 }
 0x34d   : > { %2949 = vmatprep.subr.bf16.mxu1 %v3860_v22 }
 0x34e   : > { %2430 = vmatpush1.bf16.msra.mxu0 %v3765_v23  ;;  %v3858_v23 = vld [vmem:[#allocation9 + $0x90] ss:$8 sps:$4 sm:$0xff]  }
 0x34f   : > { %2431 = vmatprep.subr.bf16.mxu0 %v3770_v51  ;;  %v3863_v51 = vld [vmem:[#allocation9 + $0xa4] ss:$8 sps:$4 sm:$0xff]  }
 0x350   : > { %2950 = vmatpush1.bf16.msra.mxu1 %v3858_v23 }
 0x351   : > { %2951 = vmatprep.subr.bf16.mxu1 %v3863_v51 }
 0x352   : > { %2432 = vmatpush1.bf16.msra.mxu0 %v3768_v25  ;;  %v3861_v25 = vld [vmem:[#allocation9 + $0xa0] ss:$8 sps:$4 sm:$0xff]  }
 0x353   : > { %2433 = vmatprep.subr.bf16.mxu0 %v3773_v26  ;;  %v3866_v26 = vld [vmem:[#allocation9 + $0xb4] ss:$8 sps:$4 sm:$0xff]  }
 0x354   : > { %2952 = vmatpush1.bf16.msra.mxu1 %v3861_v25 }
 0x355   : > { %2953 = vmatprep.subr.bf16.mxu1 %v3866_v26 }
 0x356   : > { %2434 = vmatpush1.bf16.msra.mxu0 %v3771_v7  ;;  %v3864_v7 = vld [vmem:[#allocation9 + $0xb0] ss:$8 sps:$4 sm:$0xff]  }
 0x357   : > { %2435 = vmatprep.subr.bf16.mxu0 %v3776_v8  ;;  %v3869_v8 = vld [vmem:[#allocation9 + $0xc4] ss:$8 sps:$4 sm:$0xff]  }
 0x358   : > { %2954 = vmatpush1.bf16.msra.mxu1 %v3864_v7 }
 0x359   : > { %2955 = vmatprep.subr.bf16.mxu1 %v3869_v8 }
 0x35a   : > { %2436 = vmatpush1.bf16.msra.mxu0 %v3774_v43  ;;  %v3867_v43 = vld [vmem:[#allocation9 + $0xc0] ss:$8 sps:$4 sm:$0xff]  }
 0x35b   : > { %2437 = vmatprep.subr.bf16.mxu0 %v3779_v59  ;;  %v3872_v59 = vld [vmem:[#allocation9 + $0xd4] ss:$8 sps:$4 sm:$0xff]  }
 0x35c   : > { %2956 = vmatpush1.bf16.msra.mxu1 %v3867_v43 }
 0x35d   : > { %2957 = vmatprep.subr.bf16.mxu1 %v3872_v59 }
 0x35e   : > { %2438 = vmatpush1.bf16.msra.mxu0 %v3777_v46  ;;  %v3870_v46 = vld [vmem:[#allocation9 + $0xd0] ss:$8 sps:$4 sm:$0xff]  }
 0x35f   : > { %2439 = vmatprep.subr.bf16.mxu0 %v3782_v47  ;;  %v2452_v47 = vld [vmem:[%s4826_s6] sm:$0x3] }
 0x360   : > { %2958 = vmatpush1.bf16.msra.mxu1 %v3870_v46 }
 0x362   : > { %2440 = vmatpush1.bf16.msra.mxu0 %v3780_v10  ;;  %v2457_v10 = vrot.slane %v2452_v47, %v4542_v30 }
 0x363   : > { %2678 = vmatprep.subr.bf16.mxu0 %v3785_v11  ;;  %v2461_v11 = vrot.slane %v2452_v47, %v4888_v50 }
 0x365   : > { %2442 = vmatmul.mubr.bf16.vlgmr.msra.gmra.mrb[48].mxu0 %v1978_v55  ;;  %v3806_v55 = vld [vmem:[#allocation8 + $0x74] ss:$8 sps:$4 sm:$0xff]  }
 0x366   : > { %2679 = vmatpush1.bf16.msra.mxu0 %v3783_v49 }
 0x367   : > { %2680 = vmatprep.subr.bf16.mxu0 %v3788_v29 }
 0x36a   : > { %2681 = vmatpush1.bf16.msra.mxu0 %v3786_v60 }
 0x36b   : > { %2682 = vmatprep.subr.bf16.mxu0 %v3791_v14 }
 0x36e   : > { %2683 = vmatpush1.bf16.msra.mxu0 %v3789_v61 }
 0x36f   : > { %2684 = vmatprep.subr.bf16.mxu0 %v3794_v9 }
 0x372   : > { %2685 = vmatpush1.bf16.msra.mxu0 %v3792_v52 }
 0x373   : > { %2686 = vmatprep.subr.bf16.mxu0 %v3797_v53 }
 0x376   : > { %2687 = vmatpush1.bf16.msra.mxu0 %v3795_v21 }
 0x377   : > { %2688 = vmatprep.subr.bf16.mxu0 %v3800_v62 }
 0x37a   : > { %2689 = vmatpush1.bf16.msra.mxu0 %v3798_v16 }
 0x37b   : > { %2690 = vmatprep.subr.bf16.mxu0 %v3803_v15 }
 0x37e   : > { %2691 = vmatpush1.bf16.msra.mxu0 %v3801_v27 }
 0x37f   : > { %2692 = vmatprep.subr.bf16.mxu0 %v3806_v55 }
 0x382   : > { %2693 = vmatpush1.bf16.msra.mxu0 %v3804_v17  ;;  %v3875_v17 = vld [vmem:[#allocation9 + $0xe4] ss:$8 sps:$4 sm:$0xff]  }
 0x383   : > { %2694 = vmatprep.subr.bf16.mxu0 %v3809_v18  ;;  %v3873_v18 = vld [vmem:[#allocation9 + $0xe0] ss:$8 sps:$4 sm:$0xff]   ;;  %2959 = vmatprep.subr.bf16.mxu1 %v3875_v17 }
 0x384   : > { %2960 = vmatpush1.bf16.msra.mxu1 %v3873_v18 }
 0x386   : > { %2695 = vmatpush1.bf16.msra.mxu0 %v3807_v32  ;;  %v3878_v32 = vld [vmem:[#allocation9 + $0xf4] ss:$8 sps:$4 sm:$0xff]  }
 0x387   : > { %2696 = vmatprep.subr.bf16.mxu0 %v3812_v2  ;;  %v3876_v2 = vld [vmem:[#allocation9 + $0xf0] ss:$8 sps:$4 sm:$0xff]   ;;  %2961 = vmatprep.subr.bf16.mxu1 %v3878_v32 }
 0x388   : > { %2962 = vmatpush1.bf16.msra.mxu1 %v3876_v2 }
 0x38a   : > { %2697 = vmatpush1.bf16.msra.mxu0 %v3810_v34  ;;  %v2506_v34 = vld [vmem:[%s4828_s8] sm:$0x3] }
 0x38b   : > { %2698 = vmatprep.subr.bf16.mxu0 %v3815_v35  ;;  %v2511_v35 = vrot.slane %v2506_v34, %v4542_v30 }
 0x38e   : > { %2699 = vmatpush1.bf16.msra.mxu0 %v3813_v0  ;;  %v2515_v0 = vrot.slane %v2506_v34, %v4888_v50 }
 0x38f   : > { %2700 = vmatprep.subr.bf16.mxu0 %v3818_v57 }
 0x392   : > { %2701 = vmatpush1.bf16.msra.mxu0 %v3816_v3 }
 0x393   : > { %2702 = vmatprep.subr.bf16.mxu0 %v3821_v42 }
 0x396   : > { %2703 = vmatpush1.bf16.msra.mxu0 %v3819_v45 }
 0x397   : > { %2704 = vmatprep.subr.bf16.mxu0 %v3824_v4 }
 0x39a   : > { %2705 = vmatpush1.bf16.msra.mxu0 %v3822_v37 }
 0x39b   : > { %2706 = vmatprep.subr.bf16.mxu0 %v3827_v36 }
 0x39e   : > { %2707 = vmatpush1.bf16.msra.mxu0 %v3825_v39 }
 0x39f   : > { %2708 = vmatprep.subr.bf16.mxu0 %v3830_v38 }
 0x3a2   : > { %2709 = vmatpush1.bf16.msra.mxu0 %v3828_v1 }
 0x438   : > { %v2443_v49 = vpop.f32.mrb[48].mxu0 }
 0x439   : > { %v2464_v29 = vadd.f32 %v2457_v10, %v2443_v49  ;;  %v2445_v60 = vpop.f32.mrb[49].mxu0 }
 0x43a   : > { %v2465_v14 = vadd.f32 %v2461_v11, %v2445_v60  ;;  %v2447_v61 = vpop.f32.mrb[50].mxu0 }
 0x43b   : > { %v2466_v9 = vadd.f32 %v2457_v10, %v2447_v61  ;;  %v2449_v52 = vpop.f32.mrb[51].mxu0  ;;  %v2468_v21 = vmax.f32 %v2464_v29, 0.0 }
 0x43c   : > { %v2467_v53 = vadd.f32 %v2461_v11, %v2449_v52  ;;  %v2469_v16 = vmax.f32 %v2465_v14, 0.0 }
 0x43d   : > { %v2470_v62 = vmax.f32 %v2466_v9, 0.0 }
 0x43e   : > { %v2471_v15 = vmax.f32 %v2467_v53, 0.0 }
 0x43f   : > { %v2472_v27 = vpack.c.bf16 %v2470_v62, %v2468_v21 }
 0x440   : > { %v2473_v55 = vpack.c.bf16 %v2471_v15, %v2469_v16 }
 0x442   : > { %2710 = vmatprep.mubr.bf16.mxu0 %v2473_v55 }
 0x443   : > { %2711 = vmatmul.mubr.bf16.vlgmr.msra.gmra.mrb[52].mxu0 %v2472_v27 }
 0x516   : > { %v2712_v57 = vpop.f32.mrb[52].mxu0 }
 0x517   : > { %v2713_v3 = vadd.f32 %v2712_v57, %v2511_v35  ;;  %v2714_v42 = vpop.f32.mrb[53].mxu0 }
 0x518   : > { %v2715_v45 = vadd.f32 %v2714_v42, %v2515_v0  ;;  %v2716_v4 = vpop.f32.mrb[54].mxu0 }
 0x519   : > { %v2717_v37 = vadd.f32 %v2716_v4, %v2511_v35  ;;  %v2718_v36 = vpop.f32.mrb[55].mxu0  ;;  %v2721_v38 = vmax.f32 %v2713_v3, 0.0 }
 0x51a   : > { %v2719_v39 = vadd.f32 %v2718_v36, %v2515_v0  ;;  %v2722_v5 = vmax.f32 %v2715_v45, 0.0 }
 0x51b   : > { %v2723_v1 = vmax.f32 %v2717_v37, 0.0 }
 0x51c   : > { %v2724_v13 = vmax.f32 %v2719_v39, 0.0 }
 0x51d   : > { %v2725_v44 = vpack.c.bf16 %v2723_v1, %v2721_v38 }
 0x51e   : > { %v2726_v63 = vpack.c.bf16 %v2724_v13, %v2722_v5 }
 0x520   : > { %2963 = vmatprep.mubr.bf16.mxu1 %v2726_v63 }
 0x521   : > { %2964 = vmatmul.mubr.bf16.vlgmr.msra.gmra.mrb[48].mxu1 %v2725_v44 }
 0x5f4   : > { %v2965_v31 = vpop.f32.mrb[48].mxu1 }
 0x5f5   : > { %v2966_v6 = vadd.f32 %v2965_v31, %v2764_v56  ;;  %v2967_v12 = vpop.f32.mrb[49].mxu1 }
 0x5f6   : > { %v2968_v48 = vadd.f32 %v2967_v12, %v2768_v58  ;;  %v2969_v33 = vpop.f32.mrb[50].mxu1 }
 0x5f7   : > { %v2974_v24 = vmax.f32 %v2966_v6, 0.0  ;;  %v2970_v54 = vadd.f32 %v2969_v33, %v2764_v56  ;;  %v2971_v19 = vpop.f32.mrb[51].mxu1 }
 0x5f8   : > { %v2975_v40 = vmax.f32 %v2968_v48, 0.0  ;;  %v2972_v41 = vadd.f32 %v2971_v19, %v2768_v58 }
 0x5f9   : > { %2978 = vst [vmem:[%s439_s29] sm:$0xff] %v2974_v24  ;;  %v2976_v30 = vmax.f32 %v2970_v54, 0.0 }
 0x5fa   : > { %2979 = vst [vmem:[%s439_s29 + $0x8] sm:$0xff] %v2975_v40  ;;  %v2977_v50 = vmax.f32 %v2972_v41, 0.0 }
 0x5fb   : > { %2980 = vst [vmem:[%s439_s29 + $0x10] sm:$0xff] %v2976_v30 }
 0x5fc   : > { %2981 = vst [vmem:[%s439_s29 + $0x18] sm:$0xff] %v2977_v50 }
 0x5fd   : > { %4004 = shalt.err (!%p4001_p0)
}
 0x5fe   : > { %s4005_s12 = scalar_lea.hbm %s4777_s25, 512  ;;  %s4009_s11 = scalar_lea.hbm %s4890_s28, 1024 }
 0x5ff   : > { %p4006_p10 = scmp.ne.s32.totalorder %s4777_s25, %s4005_s12  ;;  %p4010_p4 = scmp.lt.u32.totalorder %s4777_s25, %s4890_s28 }
 0x600   : > { %p4011_p12 = scmp.lt.u32.totalorder %s4009_s11, %s4005_s12  ;;  %p4013_p8 = scmp.lt.u32.totalorder %s4005_s12, %s4777_s25 }
 0x601   : > { %p4007_p2 = pnand %p4006_p10, %p4891_p11 }
 0x602   : > { %p4012_p7 = por %p4011_p12, %p4010_p4 }
 0x603   : > { %p4008_p3 = pneg %p4007_p2 }
 0x604   : > { %p4014_p13 = por %p4013_p8, %p4012_p7 }
 0x606   : > { %p4015_p1 = pnand %p4014_p13, %p4008_p3 }
 0x608   : > { %4018 = shalt.err (!%p4015_p1)
}
 0x609   : > { %s4075_s24 = smov 256   ;;  %s4076_s26 = smov 16  }
 0x60a   : > { %3453 = dma.vmem_to_hbm [thread:$0]  (%p4891_p11), %s4772_s13, 512, %s4777_s25, %s4779_s21, %s4075_s24, %s4075_s24, %s4076_s26  }
 0x60b PF: > { %s4892_s17 = sld [smem:[#allocation18_spill]]  ;;  %s4893_s20 = sld [smem:[#allocation16_spill]] }
 0x60c   : > { %s4894_s30 = sld [smem:[#allocation21_spill]] }
 0x611   : > { %p3480_p6 = scmp.ge.s32.totalorder %s4892_s17, 2  ;;  %s3012_s14 = sand.u32 1, %s4893_s20  }
 0x612   : > { %p4895_p9 = scmp.ne.s32.totalorder %s4894_s30, 0  ;;  %s3013_s16 = scalar_lea.sflag [#allocation5], %s3012_s14 }
 0x614   : > { %p3469_p5 = pnand %p3480_p6, %p4895_p9 }
 0x616   : > { %4048 = dma.done.wait (!%p3469_p5), %s3013_s16, 512  }
 0x617   : > { %4050 = vsyncadd (!%p3469_p5), %s3013_s16, 4294966784  ;;  %s4896_s20 = sld [smem:[#allocation19_spill]]  ;;  %s4897_s19 = sld [smem:[#allocation17_spill]] }
 0x618   : > { %s4898_s12 = sld [smem:[#allocation20_spill]]  ;;  %s4899_s17 = smov %s4057_s18 }
 0x61d   : > { %p24_p0 = scmp.ge.s32.totalorder %s4896_s20, 4   ;;  %s4900_s18 = smov %s4897_s19 }
 0x61e   : > { %s4901_s19 = smov %s4898_s12 }
 0x61f   :  { %26 = sbr.rel (!%p24_p0) target bundleno = 8 (0x8), region = 116 }
 0x626   :  { %3018 = vsyncpa [#allocation4], 1 }
 0x627   :  { %3020 = vsyncpa [#allocation4 + $0x1], 1 }
 0x628   :  { %3021 = vsyncpa [#allocation7], 1 }
 0x629   :  { %3022 = vsyncpa [#allocation10], 1 }
 0x62a   :  { %3023 = vsyncpa [#allocation5], 1 }
 0x62b   :  { %3025 = vsyncpa [#allocation5 + $0x1], 1 }

</bundles_post_ra>
